<compile_context>
chip_gen: v7x
topology: tpu7x:2x2x1
jax: 0.10.0
libtpu: 0.0.40
codegen_flags: <defaults>
</compile_context>

<pallas_src>
import math
from functools import partial

import jax
import jax.numpy as jnp
from jax import lax
from jax.experimental import pallas as pl
from jax.experimental.pallas import tpu as pltpu

F32 = jnp.float32
COMPUTE_DTYPE = jnp.bfloat16          # MXU operand dtype (accumulation stays f32)

_ROW_TILE_CAP = 512                   # row-block cap (multiple of 8)
_COL_TILE_CAP = 1024                  # output-column block cap (multiple of 128)
_VMEM_BUDGET = 24 * 1024 * 1024       # target double-buffered working set per step
_VMEM_LIMIT = 48 * 1024 * 1024        # scoped VMEM limit (under v7x's 64 MiB physical)


def _pick_tiles(n, d_in, d_out, x_bytes, w_bytes, o_bytes, extra_row_bytes=0):
    """Largest (tm, tn) under the VMEM budget; keeps dims full or (8,128)-aligned."""
    tm = n if n <= _ROW_TILE_CAP else _ROW_TILE_CAP
    tn = d_out if d_out <= _COL_TILE_CAP else _COL_TILE_CAP

    def footprint(tm_, tn_):
        return (2 * (tm_ * d_in * x_bytes + d_in * tn_ * w_bytes + tm_ * tn_ * o_bytes)
                + tm_ * extra_row_bytes)

    while footprint(tm, tn) > _VMEM_BUDGET and tn > 128 and tn % 256 == 0:
        tn //= 2
    while footprint(tm, tn) > _VMEM_BUDGET and tm > 128 and tm % 16 == 0:
        tm //= 2
    return tm, tn


def _gelu_tanh(x):
    # TODO(synk): switch to exact erf GELU in-kernel once Mosaic erf lowering is confirmed.
    return 0.5 * x * (1.0 + jnp.tanh(0.7978845608028654 * (x + 0.044715 * x * x * x)))


# ----------------------------- Pallas kernels ------------------------------

def _rmsnorm_kernel(x_ref, s_ref, o_ref, *, eps):
    x = x_ref[...].astype(jnp.float32)
    d = x.shape[-1]
    rms = jnp.sqrt(jnp.sum(x * x, axis=-1, keepdims=True)) * (d ** -0.5)
    o_ref[...] = (s_ref[...].astype(jnp.float32) * (x / (rms + eps))).astype(o_ref.dtype)


def rmsnorm(x2d, scale, eps=1e-8):
    """x2d: [N, d].  rms = ||x|| * d^-0.5; out = scale * x / (rms + eps)."""
    n, d = x2d.shape
    tm = n if n <= _ROW_TILE_CAP else _ROW_TILE_CAP
    return pl.pallas_call(
        partial(_rmsnorm_kernel, eps=eps),
        out_shape=jax.ShapeDtypeStruct((n, d), x2d.dtype),
        grid=(pl.cdiv(n, tm),),
        in_specs=[pl.BlockSpec((tm, d), lambda i: (i, 0)),
                  pl.BlockSpec((1, d), lambda i: (0, 0))],
        out_specs=pl.BlockSpec((tm, d), lambda i: (i, 0)),
        compiler_params=pltpu.CompilerParams(dimension_semantics=("parallel",),
                                             vmem_limit_bytes=_VMEM_LIMIT),
    )(x2d, scale.reshape(1, d))


def _matmul_kernel(*refs, has_bias, has_residual, activation):
    """x @ w [+ b] [-> act] [+ resid] on one (tm, tn) tile. bf16 MXU, f32 accumulate."""
    i = 0
    x_ref = refs[i]; i += 1
    w_ref = refs[i]; i += 1
    b_ref = refs[i] if has_bias else None
    i += int(has_bias)
    r_ref = refs[i] if has_residual else None
    i += int(has_residual)
    o_ref = refs[i]

    y = jnp.dot(x_ref[...].astype(COMPUTE_DTYPE), w_ref[...].astype(COMPUTE_DTYPE),
                preferred_element_type=jnp.float32)
    if has_bias:
        y = y + b_ref[...].astype(jnp.float32)
    if activation == 'gelu':
        y = _gelu_tanh(y)
    if has_residual:
        y = r_ref[...].astype(jnp.float32) + y
    o_ref[...] = y.astype(o_ref.dtype)


def linear(x2d, w, b=None, resid=None, activation=None, out_dtype=None):
    """x2d: [N, d_in] @ w: [d_in, d_out] (+b) (activation) (+resid).  No zero-bias DMA
    when b is None.  TODO(synk): K-axis grid + f32 acc scratch for very large d_in."""
    n, d_in = x2d.shape
    d_out = w.shape[1]
    if out_dtype is None:
        out_dtype = resid.dtype if resid is not None else x2d.dtype
    tm, tn = _pick_tiles(n, d_in, d_out, x2d.dtype.itemsize, w.dtype.itemsize,
                         jnp.dtype(out_dtype).itemsize)
    in_specs = [pl.BlockSpec((tm, d_in), lambda i, j: (i, 0)),
                pl.BlockSpec((d_in, tn), lambda i, j: (0, j))]
    args = [x2d, w]
    if b is not None:
        in_specs.append(pl.BlockSpec((1, tn), lambda i, j: (0, j)))
        args.append(b.reshape(1, d_out))
    if resid is not None:
        in_specs.append(pl.BlockSpec((tm, tn), lambda i, j: (i, j)))
        args.append(resid)
    return pl.pallas_call(
        partial(_matmul_kernel, has_bias=b is not None,
                has_residual=resid is not None, activation=activation),
        out_shape=jax.ShapeDtypeStruct((n, d_out), out_dtype),
        grid=(pl.cdiv(n, tm), pl.cdiv(d_out, tn)),
        in_specs=in_specs,
        out_specs=pl.BlockSpec((tm, tn), lambda i, j: (i, j)),
        compiler_params=pltpu.CompilerParams(
            dimension_semantics=("parallel", "parallel"),
            vmem_limit_bytes=_VMEM_LIMIT),
    )(*args)


def _norm_matmul_kernel(*refs, eps, has_bias, activation):
    """RMSNorm(x) @ w [+b] [gelu].  The normalized row tile is computed once per row
    block (column grid axis j == 0) into VMEM scratch and reused for later j tiles."""
    i = 0
    x_ref = refs[i]; i += 1
    s_ref = refs[i]; i += 1
    w_ref = refs[i]; i += 1
    b_ref = refs[i] if has_bias else None
    i += int(has_bias)
    o_ref = refs[i]; i += 1
    xn_ref = refs[i]                      # VMEM scratch [tm, d_in] in COMPUTE_DTYPE

    @pl.when(pl.program_id(1) == 0)
    def _():
        x = x_ref[...].astype(jnp.float32)
        d = x.shape[-1]
        rms = jnp.sqrt(jnp.sum(x * x, axis=-1, keepdims=True)) * (d ** -0.5)
        xn = s_ref[...].astype(jnp.float32) * (x / (rms + eps))
        xn_ref[...] = xn.astype(xn_ref.dtype)

    y = jnp.dot(xn_ref[...], w_ref[...].astype(COMPUTE_DTYPE),
                preferred_element_type=jnp.float32)
    if has_bias:
        y = y + b_ref[...].astype(jnp.float32)
    if activation == 'gelu':
        y = _gelu_tanh(y)
    o_ref[...] = y.astype(o_ref.dtype)


def fused_norm_linear(x2d, scale, w, b=None, activation=None, out_dtype=None, eps=1e-8):
    """RMSNorm(x) @ w (+b) (gelu) in one kernel: normed activation never hits HBM and
    the norm is amortized once per row tile."""
    n, d_in = x2d.shape
    d_out = w.shape[1]
    if out_dtype is None:
        out_dtype = x2d.dtype
    tm, tn = _pick_tiles(n, d_in, d_out, x2d.dtype.itemsize, w.dtype.itemsize,
                         jnp.dtype(out_dtype).itemsize,
                         extra_row_bytes=d_in * jnp.dtype(COMPUTE_DTYPE).itemsize)
    in_specs = [pl.BlockSpec((tm, d_in), lambda i, j: (i, 0)),
                pl.BlockSpec((1, d_in), lambda i, j: (0, 0)),
                pl.BlockSpec((d_in, tn), lambda i, j: (0, j))]
    args = [x2d, scale.reshape(1, d_in), w]
    if b is not None:
        in_specs.append(pl.BlockSpec((1, tn), lambda i, j: (0, j)))
        args.append(b.reshape(1, d_out))
    return pl.pallas_call(
        partial(_norm_matmul_kernel, eps=eps, has_bias=b is not None,
                activation=activation),
        out_shape=jax.ShapeDtypeStruct((n, d_out), out_dtype),
        grid=(pl.cdiv(n, tm), pl.cdiv(d_out, tn)),
        in_specs=in_specs,
        out_specs=pl.BlockSpec((tm, tn), lambda i, j: (i, j)),
        scratch_shapes=[pltpu.VMEM((tm, d_in), COMPUTE_DTYPE)],
        compiler_params=pltpu.CompilerParams(
            # rows parallel (megacore-splittable); column axis arbitrary so each core
            # always runs j = 0 first and the xn scratch is valid.
            dimension_semantics=("parallel", "arbitrary"),
            vmem_limit_bytes=_VMEM_LIMIT),
    )(*args)


def _attention_kernel(q_ref, k_ref, v_ref, wpe_ref, pqs_ref, pqc_ref, pk_ref, o_ref,
                      *, causal, mask_offset):
    """One batch group, all heads.  q:[H,n,dqk] k:[H,M,dqk] v:[H,M,dv] (bf16).
    wpe:[H,dqk,d_kv], pqs/pqc:[n,F] (query phases incl. offset), pk:[2F,M] (key phases,
    cos rows then sin rows, pre-tiled over neighbors).  All matmuls head-batched MXU."""
    q = q_ref[...]
    k = k_ref[...]
    v = v_ref[...]
    H, n, _ = q.shape
    M = k.shape[1]

    # content logits (MXU, batched over heads)
    content = jnp.einsum('hnd,hmd->hnm', q, k, preferred_element_type=jnp.float32)

    # relative-position logits: exact sin/cos factorization of the TransformerXL term.
    #   pos[h,i,j] = (q_h[i] @ Wpe_h) . sincos((i - j + offset) * theta)
    #             = A[h,i,:] . cos(j*theta) + B[h,i,:] . sin(j*theta)
    u = jnp.einsum('hnd,hdf->hnf', q, wpe_ref[...], preferred_element_type=jnp.float32)
    f = u.shape[-1] // 2
    u_s, u_c = u[..., :f], u[..., f:]
    sq = pqs_ref[...][None].astype(jnp.float32)          # [1, n, F]
    cq = pqc_ref[...][None].astype(jnp.float32)
    ab = jnp.concatenate([u_s * sq + u_c * cq,            # A (multiplies cos(j*theta))
                          u_c * sq - u_s * cq], axis=-1)  # B (multiplies sin(j*theta))
    pk = jnp.broadcast_to(pk_ref[...].astype(COMPUTE_DTYPE), (H,) + pk_ref.shape)
    pos = jnp.einsum('hnf,hfm->hnm', ab.astype(COMPUTE_DTYPE), pk,
                     preferred_element_type=jnp.float32)

    logits = content + pos        # NOTE: no 1/sqrt(d_qk) (module uses rescale_logits=False)
    if causal:
        row = lax.broadcasted_iota(jnp.int32, (n, M), 0)
        col = lax.broadcasted_iota(jnp.int32, (n, M), 1)
        # large finite negative instead of -inf (avoids 0/0 NaN on fully-masked rows)
        logits = jnp.where((col > row + mask_offset)[None], -1e30, logits)

    mx = jnp.max(logits, axis=-1, keepdims=True)
    e = jnp.exp(logits - mx)
    wgt = e * pl.reciprocal(jnp.sum(e, axis=-1, keepdims=True), approx=True)
    out = jnp.einsum('hnm,hmd->hnd', wgt.astype(COMPUTE_DTYPE), v,
                     preferred_element_type=jnp.float32)
    o_ref[...] = out.astype(o_ref.dtype)


def attention_pallas(q, k, v, wpe, pq_sin, pq_cos, pk, *, causal, mask_offset=0):
    """q:[*G,H,n,dqk] k:[*G,H,M,dqk] v:[*G,H,M,dv] -> [*G,H,n,dv].
    Positional / weight tables have constant index maps (DMA'd once, stay resident).
    TODO(synk): flash-style KV tiling (online softmax) for long sequences."""
    *g_dims, H, n, dqk = q.shape
    M = k.shape[-2]
    dv = v.shape[-1]
    dkv = wpe.shape[-1]
    fh = dkv // 2
    ng = len(g_dims)
    io = lambda *gs: tuple(gs) + (0, 0, 0)
    c3 = lambda *gs: (0, 0, 0)
    c2 = lambda *gs: (0, 0)
    return pl.pallas_call(
        partial(_attention_kernel, causal=causal, mask_offset=mask_offset),
        out_shape=jax.ShapeDtypeStruct(tuple(g_dims) + (H, n, dv), q.dtype),
        grid=tuple(g_dims),
        in_specs=[
            pl.BlockSpec((None,) * ng + (H, n, dqk), io),
            pl.BlockSpec((None,) * ng + (H, M, dqk), io),
            pl.BlockSpec((None,) * ng + (H, M, dv), io),
            pl.BlockSpec((H, dqk, dkv), c3),   # resident across grid steps
            pl.BlockSpec((n, fh), c2),
            pl.BlockSpec((n, fh), c2),
            pl.BlockSpec((dkv, M), c2),
        ],
        out_specs=pl.BlockSpec((None,) * ng + (H, n, dv), io),
        compiler_params=pltpu.CompilerParams(
            dimension_semantics=("parallel",) * ng,     # >=2 steps -> both v7x cores busy
            vmem_limit_bytes=_VMEM_LIMIT),
    )(q, k, v, wpe, pq_sin, pq_cos, pk)


# --------------------------- plain-JAX glue layers --------------------------

def rel_pos_tables(d_x_kv, n_q, m_keys, offset, kv_tile=1):
    """Tiny phase tables for the factored relative positional term.
    pq_*: [n, F] phases at (i + offset); pk: [2F, kv_tile*m] = [cos(j*theta); sin(j*theta)]
    per within-neighbor key position, tiled neighbor-major to match the key layout."""
    fh = d_x_kv // 2
    inv_freq = 1.0 / (10000.0 ** (jnp.arange(0.0, d_x_kv, 2.0, dtype=F32) / d_x_kv))
    qph = (jnp.arange(n_q, dtype=F32) + float(offset))[:, None] * inv_freq[None, :]
    kph = jnp.arange(m_keys, dtype=F32)[:, None] * inv_freq[None, :]
    pq_sin, pq_cos = jnp.sin(qph), jnp.cos(qph)
    pk = jnp.concatenate([jnp.cos(kph), jnp.sin(kph)], axis=-1).T        # [2F, m]
    if kv_tile > 1:
        pk = jnp.tile(pk, (1, kv_tile))                                  # neighbor-major keys
    assert pq_sin.shape == (n_q, fh)
    return pq_sin, pq_cos, pk


def self_attention_block(p, x, num_heads):
    """AttentionBlock(d, causal=True): x + to_o(attn(RMSNorm(x))).  x: [B, L, d]."""
    B, L, d = x.shape
    H = num_heads
    dqk = dv = d // H
    hq = hv = d
    x2 = x.reshape(B * L, d)
    qkv = fused_norm_linear(x2, p['norm_scale'], p['w_qkv'], out_dtype=COMPUTE_DTYPE)

    def heads(t, dh):
        return t.reshape(B, L, H, dh).transpose(0, 2, 1, 3)              # [B, H, L, dh]

    q = heads(qkv[:, :hq], dqk)
    k = heads(qkv[:, hq:2 * hq], dqk)
    v = heads(qkv[:, 2 * hq:], dv)
    pq_sin, pq_cos, pk = rel_pos_tables(d, L, L, offset=0)
    att = attention_pallas(q, k, v, p['wpe'], pq_sin, pq_cos, pk,
                           causal=True, mask_offset=0)                   # [B, H, L, dv]
    att2 = att.transpose(0, 2, 1, 3).reshape(B * L, hv)
    out = linear(att2, p['w_o'], resid=x2)                               # proj + residual fused
    return out.reshape(B, L, d)


def chunked_cross_attention_block(p, x, z, chunk_size, num_heads):
    """ChunkedCrossAttentionBlock.forward with a fresh cache (pos=0).
    x: [B, L, d], z: [B, C, Knb, m, d_enc]."""
    B, L, d = x.shape
    H = num_heads
    cs = chunk_size
    pos = 0
    num_omit = min(max(0, cs - 1 - pos), L)
    num_keep = L - num_omit
    len_pad = cs * ((pos + L) // cs - max(0, pos - (cs - 1)) // cs)
    if len_pad == 0:
        return x
    ind1_x = num_omit
    ind1_p = (num_omit + pos + 1) % cs
    ind2_p = ind1_p + num_keep
    ind1_z = ind1_x
    ind2_z = ind1_z + num_keep
    C = len_pad // cs
    dqk = dv = d // H
    hq = hv = d
    _, Cz, Knb, m, d_enc = z.shape
    assert Cz == C

    x_q_padded = jnp.zeros((B, len_pad, d), x.dtype).at[:, ind1_p:ind2_p].set(x[:, ind1_x:])
    x_q_chunked = x_q_padded.reshape(B, C, cs, d)                        # chunkenize (batch-major)

    # NOTE: the module's ChunkedCrossAttentionBlock never applies its norm in forward.
    q = linear(x_q_chunked.reshape(B * C * cs, d), p['w_q'], out_dtype=COMPUTE_DTYPE)
    q = q.reshape(B, C, cs, H, dqk).transpose(0, 1, 3, 2, 4)             # [B, C, H, cs, dqk]
    kv = linear(z.reshape(B * C * Knb * m, d_enc), p['w_kv'], out_dtype=COMPUTE_DTYPE)
    k = (kv[:, :hq].reshape(B, C, Knb, m, H, dqk)
         .transpose(0, 1, 4, 2, 3, 5).reshape(B, C, H, Knb * m, dqk))    # neighbor-major keys
    v = (kv[:, hq:].reshape(B, C, Knb, m, H, dv)
         .transpose(0, 1, 4, 2, 3, 5).reshape(B, C, H, Knb * m, dv))

    pq_sin, pq_cos, pk = rel_pos_tables(d_enc, cs, m, offset=cs - 1, kv_tile=Knb)
    att = attention_pallas(q, k, v, p['wpe'], pq_sin, pq_cos, pk,
                           causal=False)                                 # [B, C, H, cs, dv]
    att2 = att.transpose(0, 1, 3, 2, 4).reshape(B * C * cs, hv)
    zc = linear(att2, p['w_o'], out_dtype=x.dtype).reshape(B, C * cs, d)  # unchunk
    z_pad = jnp.zeros_like(x).at[:, ind1_z:ind2_z].set(zc[:, ind1_p:ind2_p])
    return x + z_pad


def feed_forward_block(p, x):
    B, L, d = x.shape
    x2 = x.reshape(B * L, d)
    # norm + first linear + bias + GELU fused (the [N, d_ff] activation never round-trips HBM
    # un-activated).  GELU uses the tanh approximation in-kernel (see TODO in _gelu_tanh).
    h1 = fused_norm_linear(x2, p['norm_scale'], p['w1'], p['b1'],
                           activation='gelu', out_dtype=COMPUTE_DTYPE)
    out = linear(h1, p['w2'], p['b2'], resid=x2)                          # second linear + residual
    return out.reshape(B, L, d)


def encoder_fn(ep, y, hx, chunk_size):
    # TODO(synk): the PyTorch Decoder takes an arbitrary user-supplied encoder; a full
    # RETRO encoder (bi-dir transformer with CA to hx) is out of scope.  Deterministic
    # stand-in: linear(y) modulated by decoder chunk means; output layout [B,C,Knb,m,d_enc].
    m, Knb, C, B, d_y = y.shape
    d_enc = ep['wy'].shape[1]
    y_t = jnp.transpose(y, (3, 2, 1, 0, 4))                              # [B, C, Knb, m, d_y]
    proj = linear(y_t.reshape(B * C * Knb * m, d_y), ep['wy'], ep['by'], out_dtype=F32)
    proj = proj.reshape(B, C, Knb, m, d_enc)
    _, L, d = hx.shape
    cs = chunk_size
    hx_chunks = hx[:, :C * cs, :].reshape(B, C, cs, d).mean(axis=2)      # [B, C, d]
    hproj = linear(hx_chunks.reshape(B * C, d), ep['wx'], out_dtype=F32).reshape(B, C, d_enc)
    return jnp.tanh(proj + 0.1 * hproj[:, :, None, None, :])


def decoder_forward(params, x, y, *, chunk_size, num_heads):
    """Decoder.forward(x, y) with fresh (empty) caches and dropout p=0.
    x: [L, B, d] (module layout), y: [m, Knb, C, B, d_y]."""
    x = jnp.transpose(x, (1, 0, 2))                # batch-major internally: [B, L, d]
    z = None
    encoded = False
    for layer in params['layers']:
        x = self_attention_block(layer['sa'], x, num_heads)
        if layer['ca'] is not None:
            if not encoded:
                B, L, d = x.shape
                hx = rmsnorm(x.reshape(B * L, d),
                             params['for_enc_norm_scale']).reshape(B, L, d)
                z = encoder_fn(params['encoder'], y, hx, chunk_size)
                encoded = True
            x = chunked_cross_attention_block(layer['ca'], x, z, chunk_size, num_heads)
        x = feed_forward_block(layer['ff'], x)
    B, L, d = x.shape
    out = rmsnorm(x.reshape(B * L, d), params['norm_scale']).reshape(B, L, d)
    return jnp.transpose(out, (1, 0, 2))           # back to [L, B, d]


# ------------------------------ parameter init ------------------------------

def init_decoder_params(key, *, num_layers, d, d_ff, d_enc, num_heads,
                        ca_start, ca_freq, d_y):
    """Random init matching the module structure; matmul weights stored pre-transposed
    ([d_in, d_out]) in bf16 so kernels never relayout or up-cast them."""
    dqk = dv = d // num_heads
    hq, hv = num_heads * dqk, num_heads * dv
    keys = iter(jax.random.split(key, num_layers * 16 + 8))

    def rnd(shape, fan_in):
        return jax.random.normal(next(keys), shape, F32) / math.sqrt(fan_in)

    def attn_params(d_x_kv, fuse_norm):
        to_q = rnd((num_heads, dqk, d), d)
        to_kv = rnd((num_heads, dqk + dv, d_x_kv), d_x_kv)
        for_pe = rnd((num_heads, dqk, d_x_kv), d_x_kv)
        to_o = rnd((d, num_heads, dv), hv)
        w_q = jnp.transpose(to_q.reshape(hq, d)).astype(COMPUTE_DTYPE)               # [d, hq]
        w_k = jnp.transpose(to_kv[:, :dqk, :].reshape(hq, d_x_kv)).astype(COMPUTE_DTYPE)
        w_v = jnp.transpose(to_kv[:, dqk:, :].reshape(hv, d_x_kv)).astype(COMPUTE_DTYPE)
        prm = {'w_o': jnp.transpose(to_o.reshape(d, hv)).astype(COMPUTE_DTYPE),      # [hv, d]
               'wpe': for_pe.astype(COMPUTE_DTYPE)}                                  # [H, dqk, d_x_kv]
        if fuse_norm:       # self-attention: q/k/v all come from RMSNorm(x)
            prm['w_qkv'] = jnp.concatenate([w_q, w_k, w_v], axis=1)                  # [d, 2hq+hv]
            prm['norm_scale'] = jnp.ones((d,), F32)
        else:               # cross-attention: q from x, k/v from encoder output
            prm['w_q'] = w_q
            prm['w_kv'] = jnp.concatenate([w_k, w_v], axis=1)                        # [d_enc, hq+hv]
        return prm

    layers = []
    for i in range(num_layers):
        sa = attn_params(d, True)
        ca = attn_params(d_enc, False) if (i >= ca_start and (i - ca_start) % ca_freq == 0) else None
        ff = {'norm_scale': jnp.ones((d,), F32),
              'w1': rnd((d, d_ff), d).astype(COMPUTE_DTYPE),
              'b1': jnp.full((d_ff,), 0.01, F32),
              'w2': rnd((d_ff, d), d_ff).astype(COMPUTE_DTYPE),
              'b2': jnp.full((d,), 0.01, F32)}
        layers.append({'sa': sa, 'ca': ca, 'ff': ff})

    return {'layers': layers,
            'for_enc_norm_scale': jnp.ones((d,), F32),
            'norm_scale': jnp.ones((d,), F32),
            'encoder': {'wy': rnd((d_y, d_enc), d_y).astype(COMPUTE_DTYPE),
                        'by': jnp.zeros((d_enc,), F32),
                        'wx': rnd((d, d_enc), d).astype(COMPUTE_DTYPE)}}


# ----------------------------------- main ------------------------------------

if __name__ == "__main__":
    num_layers = 2
    d = 32
    d_ff = 64
    d_enc = 48
    num_heads = 2
    ca_start = 1
    ca_freq = 1
    chunk_size = 4
    L = 8          # decoder sequence length
    B = 2          # batch
    m_ret = 6      # retrieved-neighbor sequence length
    Knb = 2        # number of retrieved neighbors
    d_y = 16       # raw retrieval feature dim (input to the stand-in encoder)
    C = L // chunk_size

    key = jax.random.PRNGKey(0)
    kp, kx, ky = jax.random.split(key, 3)
    params = init_decoder_params(kp, num_layers=num_layers, d=d, d_ff=d_ff,
                                 d_enc=d_enc, num_heads=num_heads,
                                 ca_start=ca_start, ca_freq=ca_freq, d_y=d_y)
    x = jax.random.normal(kx, (L, B, d), F32)
    y = jax.random.normal(ky, (m_ret, Knb, C, B, d_y), F32)

    fwd = jax.jit(partial(decoder_forward, chunk_size=chunk_size, num_heads=num_heads))
    out = fwd(params, x, y)
    out = jax.block_until_ready(out)

    assert out.shape == (L, B, d)
    assert bool(jnp.all(jnp.isfinite(out)))
    print("KERNEL_OK")
</pallas_src>

<mosaic_0001>
module attributes {stable_mosaic.version = 11 : i64} {
  func.func @_norm_matmul_kernel(%arg0: i32, %arg1: i32, %arg2: memref<16x32xf32, #tpu.memory_space<vmem>>, %arg3: memref<1x32xf32, #tpu.memory_space<vmem>>, %arg4: memref<32x96xbf16, #tpu.memory_space<vmem>>, %arg5: memref<16x96xbf16, #tpu.memory_space<vmem>>, %arg6: memref<16x32xbf16, #tpu.memory_space<vmem>>) attributes {dimension_semantics = [#tpu.dimension_semantics<parallel>, #tpu.dimension_semantics<arbitrary>], iteration_bounds = array<i64: 1, 1>, scalar_prefetch = 0 : i64, scratch_operands = 1 : i64, tpu.core_type = #tpu.core_type<tc>, window_params = [{transform_indices = @transform_0, window_bounds = array<i64: 16, 32>}, {pipeline_mode = #tpu.pipeline_mode<synchronous>, transform_indices = @transform_1, window_bounds = array<i64: 1, 32>}, {transform_indices = @transform_2, window_bounds = array<i64: 32, 96>}, {transform_indices = @transform_3, window_bounds = array<i64: 16, 96>}]} {
    %c0_i32 = arith.constant 0 : i32
    %0 = arith.cmpi eq, %arg1, %c0_i32 : i32
    %1 = arith.extui %0 : i1 to i32
    %c0_i32_0 = arith.constant 0 : i32
    %2 = arith.cmpi ne, %1, %c0_i32_0 : i32
    scf.if %2 {
      %c0_6 = arith.constant 0 : index
      %c0_7 = arith.constant 0 : index
      %8 = vector.load %arg2[%c0_6, %c0_7] : memref<16x32xf32, #tpu.memory_space<vmem>>, vector<16x32xf32>
      %9 = arith.mulf %8, %8 : vector<16x32xf32>
      %cst_8 = arith.constant dense<0.000000e+00> : vector<16xf32>
      %10 = vector.multi_reduction <add>, %9, %cst_8 [1] : vector<16x32xf32> to vector<16xf32>
      %11 = vector.shape_cast %10 : vector<16xf32> to vector<16x1xf32>
      %12 = math.sqrt %11 : vector<16x1xf32>
      %cst_9 = arith.constant 0.176776692 : f32
      %13 = vector.broadcast %cst_9 : f32 to vector<16x1xf32>
      %14 = arith.mulf %12, %13 : vector<16x1xf32>
      %c0_10 = arith.constant 0 : index
      %c0_11 = arith.constant 0 : index
      %15 = vector.load %arg3[%c0_10, %c0_11] : memref<1x32xf32, #tpu.memory_space<vmem>>, vector<1x32xf32>
      %cst_12 = arith.constant 9.99999993E-9 : f32
      %16 = vector.broadcast %cst_12 : f32 to vector<16x1xf32>
      %17 = arith.addf %14, %16 : vector<16x1xf32>
      %18 = vector.broadcast %17 : vector<16x1xf32> to vector<16x32xf32>
      %19 = arith.divf %8, %18 : vector<16x32xf32>
      %20 = vector.broadcast %15 : vector<1x32xf32> to vector<16x32xf32>
      %21 = arith.mulf %20, %19 : vector<16x32xf32>
      %22 = arith.truncf %21 : vector<16x32xf32> to vector<16x32xbf16>
      %c0_13 = arith.constant 0 : index
      %c0_14 = arith.constant 0 : index
      %23 = vector.load %arg6[%c0_13, %c0_14] : memref<16x32xbf16, #tpu.memory_space<vmem>>, vector<16x32xbf16>
      tpu.vector_store %arg6[%c0_13, %c0_14], %22 {strides = array<i32>} : memref<16x32xbf16, #tpu.memory_space<vmem>>, vector<16x32xbf16>,
    } else {
    }
    %c0 = arith.constant 0 : index
    %c0_1 = arith.constant 0 : index
    %3 = vector.load %arg6[%c0, %c0_1] : memref<16x32xbf16, #tpu.memory_space<vmem>>, vector<16x32xbf16>
    %c0_2 = arith.constant 0 : index
    %c0_3 = arith.constant 0 : index
    %4 = vector.load %arg4[%c0_2, %c0_3] : memref<32x96xbf16, #tpu.memory_space<vmem>>, vector<32x96xbf16>
    %cst = arith.constant dense<0.000000e+00> : vector<16x96xf32>
    %5 = tpu.matmul %3, %4, %cst {dimension_numbers = #tpu.dot_dimension_numbers<[1], [0], [0], [1], [0, 0, 1, 1], [], []>} : vector<16x32xbf16>, vector<32x96xbf16>, vector<16x96xf32> -> vector<16x96xf32>
    %6 = arith.truncf %5 : vector<16x96xf32> to vector<16x96xbf16>
    %c0_4 = arith.constant 0 : index
    %c0_5 = arith.constant 0 : index
    %7 = vector.load %arg5[%c0_4, %c0_5] : memref<16x96xbf16, #tpu.memory_space<vmem>>, vector<16x96xbf16>
    tpu.vector_store %arg5[%c0_4, %c0_5], %6 {strides = array<i32>} : memref<16x96xbf16, #tpu.memory_space<vmem>>, vector<16x96xbf16>,
    return
  }
  func.func @transform_0(%arg0: i32, %arg1: i32) -> (i32, i32) {
    %c0_i32 = arith.constant 0 : i32
    %c0_i32_0 = arith.constant 0 : i32
    return %arg0, %c0_i32 : i32, i32
  }
  func.func @transform_1(%arg0: i32, %arg1: i32) -> (i32, i32) {
    %c0_i32 = arith.constant 0 : i32
    %c0_i32_0 = arith.constant 0 : i32
    %c0_i32_1 = arith.constant 0 : i32
    return %c0_i32, %c0_i32_0 : i32, i32
  }
  func.func @transform_2(%arg0: i32, %arg1: i32) -> (i32, i32) {
    %c0_i32 = arith.constant 0 : i32
    %c0_i32_0 = arith.constant 0 : i32
    return %c0_i32, %arg1 : i32, i32
  }
  func.func @transform_3(%arg0: i32, %arg1: i32) -> (i32, i32) {
    %c0_i32 = arith.constant 0 : i32
    return %arg0, %arg1 : i32, i32
  }
}

module attributes {stable_mosaic.version = 11 : i64} {
  func.func @_attention_kernel(%arg0: i32, %arg1: memref<1x2x8x16xbf16, #tpu.memory_space<vmem>>, %arg2: memref<1x2x8x16xbf16, #tpu.memory_space<vmem>>, %arg3: memref<1x2x8x16xbf16, #tpu.memory_space<vmem>>, %arg4: memref<2x16x32xbf16, #tpu.memory_space<vmem>>, %arg5: memref<8x16xf32, #tpu.memory_space<vmem>>, %arg6: memref<8x16xf32, #tpu.memory_space<vmem>>, %arg7: memref<32x8xf32, #tpu.memory_space<vmem>>, %arg8: memref<1x2x8x16xbf16, #tpu.memory_space<vmem>>) attributes {dimension_semantics = [#tpu.dimension_semantics<parallel>], iteration_bounds = array<i64: 2>, scalar_prefetch = 0 : i64, scratch_operands = 0 : i64, tpu.core_type = #tpu.core_type<tc>, window_params = [{transform_indices = @transform_0, window_bounds = array<i64: 1, 2, 8, 16>}, {transform_indices = @transform_1, window_bounds = array<i64: 1, 2, 8, 16>}, {transform_indices = @transform_2, window_bounds = array<i64: 1, 2, 8, 16>}, {pipeline_mode = #tpu.pipeline_mode<synchronous>, transform_indices = @transform_3, window_bounds = array<i64: 2, 16, 32>}, {pipeline_mode = #tpu.pipeline_mode<synchronous>, transform_indices = @transform_4, window_bounds = array<i64: 8, 16>}, {pipeline_mode = #tpu.pipeline_mode<synchronous>, transform_indices = @transform_5, window_bounds = array<i64: 8, 16>}, {pipeline_mode = #tpu.pipeline_mode<synchronous>, transform_indices = @transform_6, window_bounds = array<i64: 32, 8>}, {transform_indices = @transform_7, window_bounds = array<i64: 1, 2, 8, 16>}]} {
    %c0 = arith.constant 0 : index
    %c0_0 = arith.constant 0 : index
    %c0_1 = arith.constant 0 : index
    %c0_2 = arith.constant 0 : index
    %0 = vector.load %arg1[%c0, %c0_0, %c0_1, %c0_2] : memref<1x2x8x16xbf16, #tpu.memory_space<vmem>>, vector<1x2x8x16xbf16>
    %1 = vector.shape_cast %0 : vector<1x2x8x16xbf16> to vector<2x8x16xbf16>
    %c0_3 = arith.constant 0 : index
    %c0_4 = arith.constant 0 : index
    %c0_5 = arith.constant 0 : index
    %c0_6 = arith.constant 0 : index
    %2 = vector.load %arg2[%c0_3, %c0_4, %c0_5, %c0_6] : memref<1x2x8x16xbf16, #tpu.memory_space<vmem>>, vector<1x2x8x16xbf16>
    %3 = vector.shape_cast %2 : vector<1x2x8x16xbf16> to vector<2x8x16xbf16>
    %c0_7 = arith.constant 0 : index
    %c0_8 = arith.constant 0 : index
    %c0_9 = arith.constant 0 : index
    %c0_10 = arith.constant 0 : index
    %4 = vector.load %arg3[%c0_7, %c0_8, %c0_9, %c0_10] : memref<1x2x8x16xbf16, #tpu.memory_space<vmem>>, vector<1x2x8x16xbf16>
    %5 = vector.shape_cast %4 : vector<1x2x8x16xbf16> to vector<2x8x16xbf16>
    "tpu.trace_start"() <{level = 10 : i32, message = "hnd,hmd->hnm"}> : () -> ()
    %cst = arith.constant dense<0.000000e+00> : vector<2x8x8xf32>
    %6 = tpu.matmul %1, %3, %cst {dimension_numbers = #tpu.dot_dimension_numbers<[2], [2], [1], [1], [0, 0, 0, 1, 1, 1], [0], [0]>} : vector<2x8x16xbf16>, vector<2x8x16xbf16>, vector<2x8x8xf32> -> vector<2x8x8xf32>
    "tpu.trace_stop"() : () -> ()
    %c0_11 = arith.constant 0 : index
    %c0_12 = arith.constant 0 : index
    %c0_13 = arith.constant 0 : index
    %7 = vector.load %arg4[%c0_11, %c0_12, %c0_13] : memref<2x16x32xbf16, #tpu.memory_space<vmem>>, vector<2x16x32xbf16>
    "tpu.trace_start"() <{level = 10 : i32, message = "hnd,hdf->hnf"}> : () -> ()
    %cst_14 = arith.constant dense<0.000000e+00> : vector<2x8x32xf32>
    %8 = tpu.matmul %1, %7, %cst_14 {dimension_numbers = #tpu.dot_dimension_numbers<[2], [1], [1], [2], [0, 0, 0, 1, 1, 2], [0], [0]>} : vector<2x8x16xbf16>, vector<2x16x32xbf16>, vector<2x8x32xf32> -> vector<2x8x32xf32>
    "tpu.trace_stop"() : () -> ()
    %9 = vector.extract_strided_slice %8 {offsets = [0, 0, 0], sizes = [2, 8, 16], strides = [1, 1, 1]} : vector<2x8x32xf32> to vector<2x8x16xf32>
    %10 = vector.extract_strided_slice %8 {offsets = [0, 0, 16], sizes = [2, 8, 16], strides = [1, 1, 1]} : vector<2x8x32xf32> to vector<2x8x16xf32>
    %c0_15 = arith.constant 0 : index
    %c0_16 = arith.constant 0 : index
    %11 = vector.load %arg5[%c0_15, %c0_16] : memref<8x16xf32, #tpu.memory_space<vmem>>, vector<8x16xf32>
    %12 = vector.shape_cast %11 : vector<8x16xf32> to vector<1x8x16xf32>
    %c0_17 = arith.constant 0 : index
    %c0_18 = arith.constant 0 : index
    %13 = vector.load %arg6[%c0_17, %c0_18] : memref<8x16xf32, #tpu.memory_space<vmem>>, vector<8x16xf32>
    %14 = vector.shape_cast %13 : vector<8x16xf32> to vector<1x8x16xf32>
    %15 = vector.broadcast %12 : vector<1x8x16xf32> to vector<2x8x16xf32>
    %16 = arith.mulf %9, %15 : vector<2x8x16xf32>
    %17 = vector.broadcast %14 : vector<1x8x16xf32> to vector<2x8x16xf32>
    %18 = arith.mulf %10, %17 : vector<2x8x16xf32>
    %19 = arith.addf %16, %18 : vector<2x8x16xf32>
    %20 = vector.broadcast %12 : vector<1x8x16xf32> to vector<2x8x16xf32>
    %21 = arith.mulf %10, %20 : vector<2x8x16xf32>
    %22 = vector.broadcast %14 : vector<1x8x16xf32> to vector<2x8x16xf32>
    %23 = arith.mulf %9, %22 : vector<2x8x16xf32>
    %24 = arith.subf %21, %23 : vector<2x8x16xf32>
    %25 = tpu.concatenate %19, %24 in 2 : vector<2x8x16xf32>, vector<2x8x16xf32> -> vector<2x8x32xf32>
    %c0_19 = arith.constant 0 : index
    %c0_20 = arith.constant 0 : index
    %26 = vector.load %arg7[%c0_19, %c0_20] : memref<32x8xf32, #tpu.memory_space<vmem>>, vector<32x8xf32>
    %27 = arith.truncf %26 : vector<32x8xf32> to vector<32x8xbf16>
    %28 = vector.shape_cast %27 : vector<32x8xbf16> to vector<1x32x8xbf16>
    %29 = vector.broadcast %28 : vector<1x32x8xbf16> to vector<2x32x8xbf16>
    %30 = arith.truncf %25 : vector<2x8x32xf32> to vector<2x8x32xbf16>
    "tpu.trace_start"() <{level = 10 : i32, message = "hnf,hfm->hnm"}> : () -> ()
    %cst_21 = arith.constant dense<0.000000e+00> : vector<2x8x8xf32>
    %31 = tpu.matmul %30, %29, %cst_21 {dimension_numbers = #tpu.dot_dimension_numbers<[2], [1], [1], [2], [0, 0, 0, 1, 1, 2], [0], [0]>} : vector<2x8x32xbf16>, vector<2x32x8xbf16>, vector<2x8x8xf32> -> vector<2x8x8xf32>
    "tpu.trace_stop"() : () -> ()
    %32 = arith.addf %6, %31 : vector<2x8x8xf32>
    %33 = tpu.iota {dimensions = array<i32: 0>} : vector<8x8xi32>
    %34 = tpu.iota {dimensions = array<i32: 1>} : vector<8x8xi32>
    %c0_i32 = arith.constant 0 : i32
    %35 = vector.broadcast %c0_i32 : i32 to vector<8x8xi32>
    %36 = arith.addi %33, %35 : vector<8x8xi32>
    %37 = arith.cmpi sgt, %34, %36 : vector<8x8xi32>
    %38 = vector.shape_cast %37 : vector<8x8xi1> to vector<1x8x8xi1>
    %cst_22 = arith.constant -1.000000e+30 : f32
    %39 = vector.shape_cast %38 : vector<1x8x8xi1> to vector<1x8x8xi1>
    %40 = vector.broadcast %39 : vector<1x8x8xi1> to vector<2x8x8xi1>
    %41 = vector.broadcast %cst_22 : f32 to vector<2x8x8xf32>
    %42 = arith.select %40, %41, %32 : vector<2x8x8xi1>, vector<2x8x8xf32>
    %cst_23 = arith.constant dense<0xFF800000> : vector<2x8xf32>
    %43 = vector.multi_reduction <maximumf>, %42, %cst_23 [2] : vector<2x8x8xf32> to vector<2x8xf32>
    %44 = vector.shape_cast %43 : vector<2x8xf32> to vector<2x8x1xf32>
    %45 = vector.broadcast %44 : vector<2x8x1xf32> to vector<2x8x8xf32>
    %46 = arith.subf %42, %45 : vector<2x8x8xf32>
    %47 = math.exp %46 : vector<2x8x8xf32>
    %cst_24 = arith.constant dense<0.000000e+00> : vector<2x8xf32>
    %48 = vector.multi_reduction <add>, %47, %cst_24 [2] : vector<2x8x8xf32> to vector<2x8xf32>
    %49 = vector.shape_cast %48 : vector<2x8xf32> to vector<2x8x1xf32>
    %50 = tpu.reciprocal %49 {approx = true} : vector<2x8x1xf32> -> vector<2x8x1xf32>
    %51 = vector.broadcast %50 : vector<2x8x1xf32> to vector<2x8x8xf32>
    %52 = arith.mulf %47, %51 : vector<2x8x8xf32>
    %53 = arith.truncf %52 : vector<2x8x8xf32> to vector<2x8x8xbf16>
    "tpu.trace_start"() <{level = 10 : i32, message = "hnm,hmd->hnd"}> : () -> ()
    %cst_25 = arith.constant dense<0.000000e+00> : vector<2x8x16xf32>
    %54 = tpu.matmul %53, %5, %cst_25 {dimension_numbers = #tpu.dot_dimension_numbers<[2], [1], [1], [2], [0, 0, 0, 1, 1, 2], [0], [0]>} : vector<2x8x8xbf16>, vector<2x8x16xbf16>, vector<2x8x16xf32> -> vector<2x8x16xf32>
    "tpu.trace_stop"() : () -> ()
    %55 = arith.truncf %54 : vector<2x8x16xf32> to vector<2x8x16xbf16>
    %c0_26 = arith.constant 0 : index
    %c0_27 = arith.constant 0 : index
    %c0_28 = arith.constant 0 : index
    %c0_29 = arith.constant 0 : index
    %56 = vector.load %arg8[%c0_26, %c0_27, %c0_28, %c0_29] : memref<1x2x8x16xbf16, #tpu.memory_space<vmem>>, vector<1x2x8x16xbf16>
    %57 = vector.shape_cast %56 : vector<1x2x8x16xbf16> to vector<2x8x16xbf16>
    %58 = vector.shape_cast %55 : vector<2x8x16xbf16> to vector<1x2x8x16xbf16>
    tpu.vector_store %arg8[%c0_26, %c0_27, %c0_28, %c0_29], %58 {strides = array<i32>} : memref<1x2x8x16xbf16, #tpu.memory_space<vmem>>, vector<1x2x8x16xbf16>,
    return
  }
  func.func @transform_0(%arg0: i32) -> (i32, i32, i32, i32) {
    %c0_i32 = arith.constant 0 : i32
    %c0_i32_0 = arith.constant 0 : i32
    %c0_i32_1 = arith.constant 0 : i32
    %c0_i32_2 = arith.constant 0 : i32
    return %arg0, %c0_i32, %c0_i32_0, %c0_i32_1 : i32, i32, i32, i32
  }
  func.func @transform_1(%arg0: i32) -> (i32, i32, i32, i32) {
    %c0_i32 = arith.constant 0 : i32
    %c0_i32_0 = arith.constant 0 : i32
    %c0_i32_1 = arith.constant 0 : i32
    %c0_i32_2 = arith.constant 0 : i32
    return %arg0, %c0_i32, %c0_i32_0, %c0_i32_1 : i32, i32, i32, i32
  }
  func.func @transform_2(%arg0: i32) -> (i32, i32, i32, i32) {
    %c0_i32 = arith.constant 0 : i32
    %c0_i32_0 = arith.constant 0 : i32
    %c0_i32_1 = arith.constant 0 : i32
    %c0_i32_2 = arith.constant 0 : i32
    return %arg0, %c0_i32, %c0_i32_0, %c0_i32_1 : i32, i32, i32, i32
  }
  func.func @transform_3(%arg0: i32) -> (i32, i32, i32) {
    %c0_i32 = arith.constant 0 : i32
    %c0_i32_0 = arith.constant 0 : i32
    %c0_i32_1 = arith.constant 0 : i32
    %c0_i32_2 = arith.constant 0 : i32
    return %c0_i32, %c0_i32_0, %c0_i32_1 : i32, i32, i32
  }
  func.func @transform_4(%arg0: i32) -> (i32, i32) {
    %c0_i32 = arith.constant 0 : i32
    %c0_i32_0 = arith.constant 0 : i32
    %c0_i32_1 = arith.constant 0 : i32
    return %c0_i32, %c0_i32_0 : i32, i32
  }
  func.func @transform_5(%arg0: i32) -> (i32, i32) {
    %c0_i32 = arith.constant 0 : i32
    %c0_i32_0 = arith.constant 0 : i32
    %c0_i32_1 = arith.constant 0 : i32
    return %c0_i32, %c0_i32_0 : i32, i32
  }
  func.func @transform_6(%arg0: i32) -> (i32, i32) {
    %c0_i32 = arith.constant 0 : i32
    %c0_i32_0 = arith.constant 0 : i32
    %c0_i32_1 = arith.constant 0 : i32
    return %c0_i32, %c0_i32_0 : i32, i32
  }
  func.func @transform_7(%arg0: i32) -> (i32, i32, i32, i32) {
    %c0_i32 = arith.constant 0 : i32
    %c0_i32_0 = arith.constant 0 : i32
    %c0_i32_1 = arith.constant 0 : i32
    %c0_i32_2 = arith.constant 0 : i32
    return %arg0, %c0_i32, %c0_i32_0, %c0_i32_1 : i32, i32, i32, i32
  }
}

module attributes {stable_mosaic.version = 11 : i64} {
  func.func @_matmul_kernel(%arg0: i32, %arg1: i32, %arg2: memref<16x32xbf16, #tpu.memory_space<vmem>>, %arg3: memref<32x32xbf16, #tpu.memory_space<vmem>>, %arg4: memref<16x32xf32, #tpu.memory_space<vmem>>, %arg5: memref<16x32xf32, #tpu.memory_space<vmem>>) attributes {dimension_semantics = [#tpu.dimension_semantics<parallel>, #tpu.dimension_semantics<parallel>], iteration_bounds = array<i64: 1, 1>, scalar_prefetch = 0 : i64, scratch_operands = 0 : i64, tpu.core_type = #tpu.core_type<tc>, window_params = [{transform_indices = @transform_0, window_bounds = array<i64: 16, 32>}, {transform_indices = @transform_1, window_bounds = array<i64: 32, 32>}, {transform_indices = @transform_2, window_bounds = array<i64: 16, 32>}, {transform_indices = @transform_3, window_bounds = array<i64: 16, 32>}]} {
    %c0 = arith.constant 0 : index
    %c0_0 = arith.constant 0 : index
    %0 = vector.load %arg2[%c0, %c0_0] : memref<16x32xbf16, #tpu.memory_space<vmem>>, vector<16x32xbf16>
    %c0_1 = arith.constant 0 : index
    %c0_2 = arith.constant 0 : index
    %1 = vector.load %arg3[%c0_1, %c0_2] : memref<32x32xbf16, #tpu.memory_space<vmem>>, vector<32x32xbf16>
    %cst = arith.constant dense<0.000000e+00> : vector<16x32xf32>
    %2 = tpu.matmul %0, %1, %cst {dimension_numbers = #tpu.dot_dimension_numbers<[1], [0], [0], [1], [0, 0, 1, 1], [], []>} : vector<16x32xbf16>, vector<32x32xbf16>, vector<16x32xf32> -> vector<16x32xf32>
    %c0_3 = arith.constant 0 : index
    %c0_4 = arith.constant 0 : index
    %3 = vector.load %arg4[%c0_3, %c0_4] : memref<16x32xf32, #tpu.memory_space<vmem>>, vector<16x32xf32>
    %4 = arith.addf %3, %2 : vector<16x32xf32>
    %c0_5 = arith.constant 0 : index
    %c0_6 = arith.constant 0 : index
    %5 = vector.load %arg5[%c0_5, %c0_6] : memref<16x32xf32, #tpu.memory_space<vmem>>, vector<16x32xf32>
    tpu.vector_store %arg5[%c0_5, %c0_6], %4 {strides = array<i32>} : memref<16x32xf32, #tpu.memory_space<vmem>>, vector<16x32xf32>,
    return
  }
  func.func @transform_0(%arg0: i32, %arg1: i32) -> (i32, i32) {
    %c0_i32 = arith.constant 0 : i32
    %c0_i32_0 = arith.constant 0 : i32
    return %arg0, %c0_i32 : i32, i32
  }
  func.func @transform_1(%arg0: i32, %arg1: i32) -> (i32, i32) {
    %c0_i32 = arith.constant 0 : i32
    %c0_i32_0 = arith.constant 0 : i32
    return %c0_i32, %arg1 : i32, i32
  }
  func.func @transform_2(%arg0: i32, %arg1: i32) -> (i32, i32) {
    %c0_i32 = arith.constant 0 : i32
    return %arg0, %arg1 : i32, i32
  }
  func.func @transform_3(%arg0: i32, %arg1: i32) -> (i32, i32) {
    %c0_i32 = arith.constant 0 : i32
    return %arg0, %arg1 : i32, i32
  }
}

module attributes {stable_mosaic.version = 11 : i64} {
  func.func @_norm_matmul_kernel(%arg0: i32, %arg1: i32, %arg2: memref<16x32xf32, #tpu.memory_space<vmem>>, %arg3: memref<1x32xf32, #tpu.memory_space<vmem>>, %arg4: memref<32x64xbf16, #tpu.memory_space<vmem>>, %arg5: memref<1x64xf32, #tpu.memory_space<vmem>>, %arg6: memref<16x64xbf16, #tpu.memory_space<vmem>>, %arg7: memref<16x32xbf16, #tpu.memory_space<vmem>>) attributes {dimension_semantics = [#tpu.dimension_semantics<parallel>, #tpu.dimension_semantics<arbitrary>], iteration_bounds = array<i64: 1, 1>, scalar_prefetch = 0 : i64, scratch_operands = 1 : i64, tpu.core_type = #tpu.core_type<tc>, window_params = [{transform_indices = @transform_0, window_bounds = array<i64: 16, 32>}, {pipeline_mode = #tpu.pipeline_mode<synchronous>, transform_indices = @transform_1, window_bounds = array<i64: 1, 32>}, {transform_indices = @transform_2, window_bounds = array<i64: 32, 64>}, {transform_indices = @transform_3, window_bounds = array<i64: 1, 64>}, {transform_indices = @transform_4, window_bounds = array<i64: 16, 64>}]} {
    %c0_i32 = arith.constant 0 : i32
    %0 = arith.cmpi eq, %arg1, %c0_i32 : i32
    %1 = arith.extui %0 : i1 to i32
    %c0_i32_0 = arith.constant 0 : i32
    %2 = arith.cmpi ne, %1, %c0_i32_0 : i32
    scf.if %2 {
      %c0_12 = arith.constant 0 : index
      %c0_13 = arith.constant 0 : index
      %24 = vector.load %arg2[%c0_12, %c0_13] : memref<16x32xf32, #tpu.memory_space<vmem>>, vector<16x32xf32>
      %25 = arith.mulf %24, %24 : vector<16x32xf32>
      %cst_14 = arith.constant dense<0.000000e+00> : vector<16xf32>
      %26 = vector.multi_reduction <add>, %25, %cst_14 [1] : vector<16x32xf32> to vector<16xf32>
      %27 = vector.shape_cast %26 : vector<16xf32> to vector<16x1xf32>
      %28 = math.sqrt %27 : vector<16x1xf32>
      %cst_15 = arith.constant 0.176776692 : f32
      %29 = vector.broadcast %cst_15 : f32 to vector<16x1xf32>
      %30 = arith.mulf %28, %29 : vector<16x1xf32>
      %c0_16 = arith.constant 0 : index
      %c0_17 = arith.constant 0 : index
      %31 = vector.load %arg3[%c0_16, %c0_17] : memref<1x32xf32, #tpu.memory_space<vmem>>, vector<1x32xf32>
      %cst_18 = arith.constant 9.99999993E-9 : f32
      %32 = vector.broadcast %cst_18 : f32 to vector<16x1xf32>
      %33 = arith.addf %30, %32 : vector<16x1xf32>
      %34 = vector.broadcast %33 : vector<16x1xf32> to vector<16x32xf32>
      %35 = arith.divf %24, %34 : vector<16x32xf32>
      %36 = vector.broadcast %31 : vector<1x32xf32> to vector<16x32xf32>
      %37 = arith.mulf %36, %35 : vector<16x32xf32>
      %38 = arith.truncf %37 : vector<16x32xf32> to vector<16x32xbf16>
      %c0_19 = arith.constant 0 : index
      %c0_20 = arith.constant 0 : index
      %39 = vector.load %arg7[%c0_19, %c0_20] : memref<16x32xbf16, #tpu.memory_space<vmem>>, vector<16x32xbf16>
      tpu.vector_store %arg7[%c0_19, %c0_20], %38 {strides = array<i32>} : memref<16x32xbf16, #tpu.memory_space<vmem>>, vector<16x32xbf16>,
    } else {
    }
    %c0 = arith.constant 0 : index
    %c0_1 = arith.constant 0 : index
    %3 = vector.load %arg7[%c0, %c0_1] : memref<16x32xbf16, #tpu.memory_space<vmem>>, vector<16x32xbf16>
    %c0_2 = arith.constant 0 : index
    %c0_3 = arith.constant 0 : index
    %4 = vector.load %arg4[%c0_2, %c0_3] : memref<32x64xbf16, #tpu.memory_space<vmem>>, vector<32x64xbf16>
    %cst = arith.constant dense<0.000000e+00> : vector<16x64xf32>
    %5 = tpu.matmul %3, %4, %cst {dimension_numbers = #tpu.dot_dimension_numbers<[1], [0], [0], [1], [0, 0, 1, 1], [], []>} : vector<16x32xbf16>, vector<32x64xbf16>, vector<16x64xf32> -> vector<16x64xf32>
    %c0_4 = arith.constant 0 : index
    %c0_5 = arith.constant 0 : index
    %6 = vector.load %arg5[%c0_4, %c0_5] : memref<1x64xf32, #tpu.memory_space<vmem>>, vector<1x64xf32>
    %7 = vector.broadcast %6 : vector<1x64xf32> to vector<16x64xf32>
    %8 = arith.addf %5, %7 : vector<16x64xf32>
    %cst_6 = arith.constant 5.000000e-01 : f32
    %9 = vector.broadcast %cst_6 : f32 to vector<16x64xf32>
    %10 = arith.mulf %9, %8 : vector<16x64xf32>
    %cst_7 = arith.constant 4.471500e-02 : f32
    %11 = vector.broadcast %cst_7 : f32 to vector<16x64xf32>
    %12 = arith.mulf %11, %8 : vector<16x64xf32>
    %13 = arith.mulf %12, %8 : vector<16x64xf32>
    %14 = arith.mulf %13, %8 : vector<16x64xf32>
    %15 = arith.addf %8, %14 : vector<16x64xf32>
    %cst_8 = arith.constant 0.797884583 : f32
    %16 = vector.broadcast %cst_8 : f32 to vector<16x64xf32>
    %17 = arith.mulf %16, %15 : vector<16x64xf32>
    %18 = math.tanh %17 : vector<16x64xf32>
    %cst_9 = arith.constant 1.000000e+00 : f32
    %19 = vector.broadcast %cst_9 : f32 to vector<16x64xf32>
    %20 = arith.addf %19, %18 : vector<16x64xf32>
    %21 = arith.mulf %10, %20 : vector<16x64xf32>
    %22 = arith.truncf %21 : vector<16x64xf32> to vector<16x64xbf16>
    %c0_10 = arith.constant 0 : index
    %c0_11 = arith.constant 0 : index
    %23 = vector.load %arg6[%c0_10, %c0_11] : memref<16x64xbf16, #tpu.memory_space<vmem>>, vector<16x64xbf16>
    tpu.vector_store %arg6[%c0_10, %c0_11], %22 {strides = array<i32>} : memref<16x64xbf16, #tpu.memory_space<vmem>>, vector<16x64xbf16>,
    return
  }
  func.func @transform_0(%arg0: i32, %arg1: i32) -> (i32, i32) {
    %c0_i32 = arith.constant 0 : i32
    %c0_i32_0 = arith.constant 0 : i32
    return %arg0, %c0_i32 : i32, i32
  }
  func.func @transform_1(%arg0: i32, %arg1: i32) -> (i32, i32) {
    %c0_i32 = arith.constant 0 : i32
    %c0_i32_0 = arith.constant 0 : i32
    %c0_i32_1 = arith.constant 0 : i32
    return %c0_i32, %c0_i32_0 : i32, i32
  }
  func.func @transform_2(%arg0: i32, %arg1: i32) -> (i32, i32) {
    %c0_i32 = arith.constant 0 : i32
    %c0_i32_0 = arith.constant 0 : i32
    return %c0_i32, %arg1 : i32, i32
  }
  func.func @transform_3(%arg0: i32, %arg1: i32) -> (i32, i32) {
    %c0_i32 = arith.constant 0 : i32
    %c0_i32_0 = arith.constant 0 : i32
    return %c0_i32, %arg1 : i32, i32
  }
  func.func @transform_4(%arg0: i32, %arg1: i32) -> (i32, i32) {
    %c0_i32 = arith.constant 0 : i32
    return %arg0, %arg1 : i32, i32
  }
}

module attributes {stable_mosaic.version = 11 : i64} {
  func.func @_matmul_kernel(%arg0: i32, %arg1: i32, %arg2: memref<16x64xbf16, #tpu.memory_space<vmem>>, %arg3: memref<64x32xbf16, #tpu.memory_space<vmem>>, %arg4: memref<1x32xf32, #tpu.memory_space<vmem>>, %arg5: memref<16x32xf32, #tpu.memory_space<vmem>>, %arg6: memref<16x32xf32, #tpu.memory_space<vmem>>) attributes {dimension_semantics = [#tpu.dimension_semantics<parallel>, #tpu.dimension_semantics<parallel>], iteration_bounds = array<i64: 1, 1>, scalar_prefetch = 0 : i64, scratch_operands = 0 : i64, tpu.core_type = #tpu.core_type<tc>, window_params = [{transform_indices = @transform_0, window_bounds = array<i64: 16, 64>}, {transform_indices = @transform_1, window_bounds = array<i64: 64, 32>}, {transform_indices = @transform_2, window_bounds = array<i64: 1, 32>}, {transform_indices = @transform_3, window_bounds = array<i64: 16, 32>}, {transform_indices = @transform_4, window_bounds = array<i64: 16, 32>}]} {
    %c0 = arith.constant 0 : index
    %c0_0 = arith.constant 0 : index
    %0 = vector.load %arg2[%c0, %c0_0] : memref<16x64xbf16, #tpu.memory_space<vmem>>, vector<16x64xbf16>
    %c0_1 = arith.constant 0 : index
    %c0_2 = arith.constant 0 : index
    %1 = vector.load %arg3[%c0_1, %c0_2] : memref<64x32xbf16, #tpu.memory_space<vmem>>, vector<64x32xbf16>
    %cst = arith.constant dense<0.000000e+00> : vector<16x32xf32>
    %2 = tpu.matmul %0, %1, %cst {dimension_numbers = #tpu.dot_dimension_numbers<[1], [0], [0], [1], [0, 0, 1, 1], [], []>} : vector<16x64xbf16>, vector<64x32xbf16>, vector<16x32xf32> -> vector<16x32xf32>
    %c0_3 = arith.constant 0 : index
    %c0_4 = arith.constant 0 : index
    %3 = vector.load %arg4[%c0_3, %c0_4] : memref<1x32xf32, #tpu.memory_space<vmem>>, vector<1x32xf32>
    %4 = vector.broadcast %3 : vector<1x32xf32> to vector<16x32xf32>
    %5 = arith.addf %2, %4 : vector<16x32xf32>
    %c0_5 = arith.constant 0 : index
    %c0_6 = arith.constant 0 : index
    %6 = vector.load %arg5[%c0_5, %c0_6] : memref<16x32xf32, #tpu.memory_space<vmem>>, vector<16x32xf32>
    %7 = arith.addf %6, %5 : vector<16x32xf32>
    %c0_7 = arith.constant 0 : index
    %c0_8 = arith.constant 0 : index
    %8 = vector.load %arg6[%c0_7, %c0_8] : memref<16x32xf32, #tpu.memory_space<vmem>>, vector<16x32xf32>
    tpu.vector_store %arg6[%c0_7, %c0_8], %7 {strides = array<i32>} : memref<16x32xf32, #tpu.memory_space<vmem>>, vector<16x32xf32>,
    return
  }
  func.func @transform_0(%arg0: i32, %arg1: i32) -> (i32, i32) {
    %c0_i32 = arith.constant 0 : i32
    %c0_i32_0 = arith.constant 0 : i32
    return %arg0, %c0_i32 : i32, i32
  }
  func.func @transform_1(%arg0: i32, %arg1: i32) -> (i32, i32) {
    %c0_i32 = arith.constant 0 : i32
    %c0_i32_0 = arith.constant 0 : i32
    return %c0_i32, %arg1 : i32, i32
  }
  func.func @transform_2(%arg0: i32, %arg1: i32) -> (i32, i32) {
    %c0_i32 = arith.constant 0 : i32
    %c0_i32_0 = arith.constant 0 : i32
    return %c0_i32, %arg1 : i32, i32
  }
  func.func @transform_3(%arg0: i32, %arg1: i32) -> (i32, i32) {
    %c0_i32 = arith.constant 0 : i32
    return %arg0, %arg1 : i32, i32
  }
  func.func @transform_4(%arg0: i32, %arg1: i32) -> (i32, i32) {
    %c0_i32 = arith.constant 0 : i32
    return %arg0, %arg1 : i32, i32
  }
}

module attributes {stable_mosaic.version = 11 : i64} {
  func.func @_rmsnorm_kernel(%arg0: i32, %arg1: memref<16x32xf32, #tpu.memory_space<vmem>>, %arg2: memref<1x32xf32, #tpu.memory_space<vmem>>, %arg3: memref<16x32xf32, #tpu.memory_space<vmem>>) attributes {dimension_semantics = [#tpu.dimension_semantics<parallel>], iteration_bounds = array<i64: 1>, scalar_prefetch = 0 : i64, scratch_operands = 0 : i64, tpu.core_type = #tpu.core_type<tc>, window_params = [{transform_indices = @transform_0, window_bounds = array<i64: 16, 32>}, {pipeline_mode = #tpu.pipeline_mode<synchronous>, transform_indices = @transform_1, window_bounds = array<i64: 1, 32>}, {transform_indices = @transform_2, window_bounds = array<i64: 16, 32>}]} {
    %c0 = arith.constant 0 : index
    %c0_0 = arith.constant 0 : index
    %0 = vector.load %arg1[%c0, %c0_0] : memref<16x32xf32, #tpu.memory_space<vmem>>, vector<16x32xf32>
    %1 = arith.mulf %0, %0 : vector<16x32xf32>
    %cst = arith.constant dense<0.000000e+00> : vector<16xf32>
    %2 = vector.multi_reduction <add>, %1, %cst [1] : vector<16x32xf32> to vector<16xf32>
    %3 = vector.shape_cast %2 : vector<16xf32> to vector<16x1xf32>
    %4 = math.sqrt %3 : vector<16x1xf32>
    %cst_1 = arith.constant 0.176776692 : f32
    %5 = vector.broadcast %cst_1 : f32 to vector<16x1xf32>
    %6 = arith.mulf %4, %5 : vector<16x1xf32>
    %c0_2 = arith.constant 0 : index
    %c0_3 = arith.constant 0 : index
    %7 = vector.load %arg2[%c0_2, %c0_3] : memref<1x32xf32, #tpu.memory_space<vmem>>, vector<1x32xf32>
    %cst_4 = arith.constant 9.99999993E-9 : f32
    %8 = vector.broadcast %cst_4 : f32 to vector<16x1xf32>
    %9 = arith.addf %6, %8 : vector<16x1xf32>
    %10 = vector.broadcast %9 : vector<16x1xf32> to vector<16x32xf32>
    %11 = arith.divf %0, %10 : vector<16x32xf32>
    %12 = vector.broadcast %7 : vector<1x32xf32> to vector<16x32xf32>
    %13 = arith.mulf %12, %11 : vector<16x32xf32>
    %c0_5 = arith.constant 0 : index
    %c0_6 = arith.constant 0 : index
    %14 = vector.load %arg3[%c0_5, %c0_6] : memref<16x32xf32, #tpu.memory_space<vmem>>, vector<16x32xf32>
    tpu.vector_store %arg3[%c0_5, %c0_6], %13 {strides = array<i32>} : memref<16x32xf32, #tpu.memory_space<vmem>>, vector<16x32xf32>,
    return
  }
  func.func @transform_0(%arg0: i32) -> (i32, i32) {
    %c0_i32 = arith.constant 0 : i32
    %c0_i32_0 = arith.constant 0 : i32
    return %arg0, %c0_i32 : i32, i32
  }
  func.func @transform_1(%arg0: i32) -> (i32, i32) {
    %c0_i32 = arith.constant 0 : i32
    %c0_i32_0 = arith.constant 0 : i32
    %c0_i32_1 = arith.constant 0 : i32
    return %c0_i32, %c0_i32_0 : i32, i32
  }
  func.func @transform_2(%arg0: i32) -> (i32, i32) {
    %c0_i32 = arith.constant 0 : i32
    %c0_i32_0 = arith.constant 0 : i32
    return %arg0, %c0_i32 : i32, i32
  }
}

module attributes {stable_mosaic.version = 11 : i64} {
  func.func @_matmul_kernel(%arg0: i32, %arg1: i32, %arg2: memref<4x32xf32, #tpu.memory_space<vmem>>, %arg3: memref<32x48xbf16, #tpu.memory_space<vmem>>, %arg4: memref<4x48xf32, #tpu.memory_space<vmem>>) attributes {dimension_semantics = [#tpu.dimension_semantics<parallel>, #tpu.dimension_semantics<parallel>], iteration_bounds = array<i64: 1, 1>, scalar_prefetch = 0 : i64, scratch_operands = 0 : i64, tpu.core_type = #tpu.core_type<tc>, window_params = [{transform_indices = @transform_0, window_bounds = array<i64: 4, 32>}, {transform_indices = @transform_1, window_bounds = array<i64: 32, 48>}, {transform_indices = @transform_2, window_bounds = array<i64: 4, 48>}]} {
    %c0 = arith.constant 0 : index
    %c0_0 = arith.constant 0 : index
    %0 = vector.load %arg2[%c0, %c0_0] : memref<4x32xf32, #tpu.memory_space<vmem>>, vector<4x32xf32>
    %1 = arith.truncf %0 : vector<4x32xf32> to vector<4x32xbf16>
    %c0_1 = arith.constant 0 : index
    %c0_2 = arith.constant 0 : index
    %2 = vector.load %arg3[%c0_1, %c0_2] : memref<32x48xbf16, #tpu.memory_space<vmem>>, vector<32x48xbf16>
    %cst = arith.constant dense<0.000000e+00> : vector<4x48xf32>
    %3 = tpu.matmul %1, %2, %cst {dimension_numbers = #tpu.dot_dimension_numbers<[1], [0], [0], [1], [0, 0, 1, 1], [], []>} : vector<4x32xbf16>, vector<32x48xbf16>, vector<4x48xf32> -> vector<4x48xf32>
    %c0_3 = arith.constant 0 : index
    %c0_4 = arith.constant 0 : index
    %4 = vector.load %arg4[%c0_3, %c0_4] : memref<4x48xf32, #tpu.memory_space<vmem>>, vector<4x48xf32>
    tpu.vector_store %arg4[%c0_3, %c0_4], %3 {strides = array<i32>} : memref<4x48xf32, #tpu.memory_space<vmem>>, vector<4x48xf32>,
    return
  }
  func.func @transform_0(%arg0: i32, %arg1: i32) -> (i32, i32) {
    %c0_i32 = arith.constant 0 : i32
    %c0_i32_0 = arith.constant 0 : i32
    return %arg0, %c0_i32 : i32, i32
  }
  func.func @transform_1(%arg0: i32, %arg1: i32) -> (i32, i32) {
    %c0_i32 = arith.constant 0 : i32
    %c0_i32_0 = arith.constant 0 : i32
    return %c0_i32, %arg1 : i32, i32
  }
  func.func @transform_2(%arg0: i32, %arg1: i32) -> (i32, i32) {
    %c0_i32 = arith.constant 0 : i32
    return %arg0, %arg1 : i32, i32
  }
}

module attributes {stable_mosaic.version = 11 : i64} {
  func.func @_matmul_kernel(%arg0: i32, %arg1: i32, %arg2: memref<48x16xf32, #tpu.memory_space<vmem>>, %arg3: memref<16x48xbf16, #tpu.memory_space<vmem>>, %arg4: memref<1x48xf32, #tpu.memory_space<vmem>>, %arg5: memref<48x48xf32, #tpu.memory_space<vmem>>) attributes {dimension_semantics = [#tpu.dimension_semantics<parallel>, #tpu.dimension_semantics<parallel>], iteration_bounds = array<i64: 1, 1>, scalar_prefetch = 0 : i64, scratch_operands = 0 : i64, tpu.core_type = #tpu.core_type<tc>, window_params = [{transform_indices = @transform_0, window_bounds = array<i64: 48, 16>}, {transform_indices = @transform_1, window_bounds = array<i64: 16, 48>}, {transform_indices = @transform_2, window_bounds = array<i64: 1, 48>}, {transform_indices = @transform_3, window_bounds = array<i64: 48, 48>}]} {
    %c0 = arith.constant 0 : index
    %c0_0 = arith.constant 0 : index
    %0 = vector.load %arg2[%c0, %c0_0] : memref<48x16xf32, #tpu.memory_space<vmem>>, vector<48x16xf32>
    %1 = arith.truncf %0 : vector<48x16xf32> to vector<48x16xbf16>
    %c0_1 = arith.constant 0 : index
    %c0_2 = arith.constant 0 : index
    %2 = vector.load %arg3[%c0_1, %c0_2] : memref<16x48xbf16, #tpu.memory_space<vmem>>, vector<16x48xbf16>
    %cst = arith.constant dense<0.000000e+00> : vector<48x48xf32>
    %3 = tpu.matmul %1, %2, %cst {dimension_numbers = #tpu.dot_dimension_numbers<[1], [0], [0], [1], [0, 0, 1, 1], [], []>} : vector<48x16xbf16>, vector<16x48xbf16>, vector<48x48xf32> -> vector<48x48xf32>
    %c0_3 = arith.constant 0 : index
    %c0_4 = arith.constant 0 : index
    %4 = vector.load %arg4[%c0_3, %c0_4] : memref<1x48xf32, #tpu.memory_space<vmem>>, vector<1x48xf32>
    %5 = vector.broadcast %4 : vector<1x48xf32> to vector<48x48xf32>
    %6 = arith.addf %3, %5 : vector<48x48xf32>
    %c0_5 = arith.constant 0 : index
    %c0_6 = arith.constant 0 : index
    %7 = vector.load %arg5[%c0_5, %c0_6] : memref<48x48xf32, #tpu.memory_space<vmem>>, vector<48x48xf32>
    tpu.vector_store %arg5[%c0_5, %c0_6], %6 {strides = array<i32>} : memref<48x48xf32, #tpu.memory_space<vmem>>, vector<48x48xf32>,
    return
  }
  func.func @transform_0(%arg0: i32, %arg1: i32) -> (i32, i32) {
    %c0_i32 = arith.constant 0 : i32
    %c0_i32_0 = arith.constant 0 : i32
    return %arg0, %c0_i32 : i32, i32
  }
  func.func @transform_1(%arg0: i32, %arg1: i32) -> (i32, i32) {
    %c0_i32 = arith.constant 0 : i32
    %c0_i32_0 = arith.constant 0 : i32
    return %c0_i32, %arg1 : i32, i32
  }
  func.func @transform_2(%arg0: i32, %arg1: i32) -> (i32, i32) {
    %c0_i32 = arith.constant 0 : i32
    %c0_i32_0 = arith.constant 0 : i32
    return %c0_i32, %arg1 : i32, i32
  }
  func.func @transform_3(%arg0: i32, %arg1: i32) -> (i32, i32) {
    %c0_i32 = arith.constant 0 : i32
    return %arg0, %arg1 : i32, i32
  }
}

module attributes {stable_mosaic.version = 11 : i64} {
  func.func @_matmul_kernel(%arg0: i32, %arg1: i32, %arg2: memref<48x48xf32, #tpu.memory_space<vmem>>, %arg3: memref<48x64xbf16, #tpu.memory_space<vmem>>, %arg4: memref<48x64xbf16, #tpu.memory_space<vmem>>) attributes {dimension_semantics = [#tpu.dimension_semantics<parallel>, #tpu.dimension_semantics<parallel>], iteration_bounds = array<i64: 1, 1>, scalar_prefetch = 0 : i64, scratch_operands = 0 : i64, tpu.core_type = #tpu.core_type<tc>, window_params = [{transform_indices = @transform_0, window_bounds = array<i64: 48, 48>}, {transform_indices = @transform_1, window_bounds = array<i64: 48, 64>}, {transform_indices = @transform_2, window_bounds = array<i64: 48, 64>}]} {
    %c0 = arith.constant 0 : index
    %c0_0 = arith.constant 0 : index
    %0 = vector.load %arg2[%c0, %c0_0] : memref<48x48xf32, #tpu.memory_space<vmem>>, vector<48x48xf32>
    %1 = arith.truncf %0 : vector<48x48xf32> to vector<48x48xbf16>
    %c0_1 = arith.constant 0 : index
    %c0_2 = arith.constant 0 : index
    %2 = vector.load %arg3[%c0_1, %c0_2] : memref<48x64xbf16, #tpu.memory_space<vmem>>, vector<48x64xbf16>
    %cst = arith.constant dense<0.000000e+00> : vector<48x64xf32>
    %3 = tpu.matmul %1, %2, %cst {dimension_numbers = #tpu.dot_dimension_numbers<[1], [0], [0], [1], [0, 0, 1, 1], [], []>} : vector<48x48xbf16>, vector<48x64xbf16>, vector<48x64xf32> -> vector<48x64xf32>
    %4 = arith.truncf %3 : vector<48x64xf32> to vector<48x64xbf16>
    %c0_3 = arith.constant 0 : index
    %c0_4 = arith.constant 0 : index
    %5 = vector.load %arg4[%c0_3, %c0_4] : memref<48x64xbf16, #tpu.memory_space<vmem>>, vector<48x64xbf16>
    tpu.vector_store %arg4[%c0_3, %c0_4], %4 {strides = array<i32>} : memref<48x64xbf16, #tpu.memory_space<vmem>>, vector<48x64xbf16>,
    return
  }
  func.func @transform_0(%arg0: i32, %arg1: i32) -> (i32, i32) {
    %c0_i32 = arith.constant 0 : i32
    %c0_i32_0 = arith.constant 0 : i32
    return %arg0, %c0_i32 : i32, i32
  }
  func.func @transform_1(%arg0: i32, %arg1: i32) -> (i32, i32) {
    %c0_i32 = arith.constant 0 : i32
    %c0_i32_0 = arith.constant 0 : i32
    return %c0_i32, %arg1 : i32, i32
  }
  func.func @transform_2(%arg0: i32, %arg1: i32) -> (i32, i32) {
    %c0_i32 = arith.constant 0 : i32
    return %arg0, %arg1 : i32, i32
  }
}

module attributes {stable_mosaic.version = 11 : i64} {
  func.func @_matmul_kernel(%arg0: i32, %arg1: i32, %arg2: memref<16x32xf32, #tpu.memory_space<vmem>>, %arg3: memref<32x32xbf16, #tpu.memory_space<vmem>>, %arg4: memref<16x32xbf16, #tpu.memory_space<vmem>>) attributes {dimension_semantics = [#tpu.dimension_semantics<parallel>, #tpu.dimension_semantics<parallel>], iteration_bounds = array<i64: 1, 1>, scalar_prefetch = 0 : i64, scratch_operands = 0 : i64, tpu.core_type = #tpu.core_type<tc>, window_params = [{transform_indices = @transform_0, window_bounds = array<i64: 16, 32>}, {transform_indices = @transform_1, window_bounds = array<i64: 32, 32>}, {transform_indices = @transform_2, window_bounds = array<i64: 16, 32>}]} {
    %c0 = arith.constant 0 : index
    %c0_0 = arith.constant 0 : index
    %0 = vector.load %arg2[%c0, %c0_0] : memref<16x32xf32, #tpu.memory_space<vmem>>, vector<16x32xf32>
    %1 = arith.truncf %0 : vector<16x32xf32> to vector<16x32xbf16>
    %c0_1 = arith.constant 0 : index
    %c0_2 = arith.constant 0 : index
    %2 = vector.load %arg3[%c0_1, %c0_2] : memref<32x32xbf16, #tpu.memory_space<vmem>>, vector<32x32xbf16>
    %cst = arith.constant dense<0.000000e+00> : vector<16x32xf32>
    %3 = tpu.matmul %1, %2, %cst {dimension_numbers = #tpu.dot_dimension_numbers<[1], [0], [0], [1], [0, 0, 1, 1], [], []>} : vector<16x32xbf16>, vector<32x32xbf16>, vector<16x32xf32> -> vector<16x32xf32>
    %4 = arith.truncf %3 : vector<16x32xf32> to vector<16x32xbf16>
    %c0_3 = arith.constant 0 : index
    %c0_4 = arith.constant 0 : index
    %5 = vector.load %arg4[%c0_3, %c0_4] : memref<16x32xbf16, #tpu.memory_space<vmem>>, vector<16x32xbf16>
    tpu.vector_store %arg4[%c0_3, %c0_4], %4 {strides = array<i32>} : memref<16x32xbf16, #tpu.memory_space<vmem>>, vector<16x32xbf16>,
    return
  }
  func.func @transform_0(%arg0: i32, %arg1: i32) -> (i32, i32) {
    %c0_i32 = arith.constant 0 : i32
    %c0_i32_0 = arith.constant 0 : i32
    return %arg0, %c0_i32 : i32, i32
  }
  func.func @transform_1(%arg0: i32, %arg1: i32) -> (i32, i32) {
    %c0_i32 = arith.constant 0 : i32
    %c0_i32_0 = arith.constant 0 : i32
    return %c0_i32, %arg1 : i32, i32
  }
  func.func @transform_2(%arg0: i32, %arg1: i32) -> (i32, i32) {
    %c0_i32 = arith.constant 0 : i32
    return %arg0, %arg1 : i32, i32
  }
}

module attributes {stable_mosaic.version = 11 : i64} {
  func.func @_attention_kernel(%arg0: i32, %arg1: i32, %arg2: memref<1x1x2x4x16xbf16, #tpu.memory_space<vmem>>, %arg3: memref<1x1x2x12x16xbf16, #tpu.memory_space<vmem>>, %arg4: memref<1x1x2x12x16xbf16, #tpu.memory_space<vmem>>, %arg5: memref<2x16x48xbf16, #tpu.memory_space<vmem>>, %arg6: memref<4x24xf32, #tpu.memory_space<vmem>>, %arg7: memref<4x24xf32, #tpu.memory_space<vmem>>, %arg8: memref<48x12xf32, #tpu.memory_space<vmem>>, %arg9: memref<1x1x2x4x16xbf16, #tpu.memory_space<vmem>>) attributes {dimension_semantics = [#tpu.dimension_semantics<parallel>, #tpu.dimension_semantics<parallel>], iteration_bounds = array<i64: 2, 2>, scalar_prefetch = 0 : i64, scratch_operands = 0 : i64, tpu.core_type = #tpu.core_type<tc>, window_params = [{transform_indices = @transform_0, window_bounds = array<i64: 1, 1, 2, 4, 16>}, {transform_indices = @transform_1, window_bounds = array<i64: 1, 1, 2, 12, 16>}, {transform_indices = @transform_2, window_bounds = array<i64: 1, 1, 2, 12, 16>}, {pipeline_mode = #tpu.pipeline_mode<synchronous>, transform_indices = @transform_3, window_bounds = array<i64: 2, 16, 48>}, {pipeline_mode = #tpu.pipeline_mode<synchronous>, transform_indices = @transform_4, window_bounds = array<i64: 4, 24>}, {pipeline_mode = #tpu.pipeline_mode<synchronous>, transform_indices = @transform_5, window_bounds = array<i64: 4, 24>}, {pipeline_mode = #tpu.pipeline_mode<synchronous>, transform_indices = @transform_6, window_bounds = array<i64: 48, 12>}, {transform_indices = @transform_7, window_bounds = array<i64: 1, 1, 2, 4, 16>}]} {
    %c0 = arith.constant 0 : index
    %c0_0 = arith.constant 0 : index
    %c0_1 = arith.constant 0 : index
    %c0_2 = arith.constant 0 : index
    %c0_3 = arith.constant 0 : index
    %0 = vector.load %arg2[%c0, %c0_0, %c0_1, %c0_2, %c0_3] : memref<1x1x2x4x16xbf16, #tpu.memory_space<vmem>>, vector<1x1x2x4x16xbf16>
    %1 = vector.shape_cast %0 : vector<1x1x2x4x16xbf16> to vector<2x4x16xbf16>
    %c0_4 = arith.constant 0 : index
    %c0_5 = arith.constant 0 : index
    %c0_6 = arith.constant 0 : index
    %c0_7 = arith.constant 0 : index
    %c0_8 = arith.constant 0 : index
    %2 = vector.load %arg3[%c0_4, %c0_5, %c0_6, %c0_7, %c0_8] : memref<1x1x2x12x16xbf16, #tpu.memory_space<vmem>>, vector<1x1x2x12x16xbf16>
    %3 = vector.shape_cast %2 : vector<1x1x2x12x16xbf16> to vector<2x12x16xbf16>
    %c0_9 = arith.constant 0 : index
    %c0_10 = arith.constant 0 : index
    %c0_11 = arith.constant 0 : index
    %c0_12 = arith.constant 0 : index
    %c0_13 = arith.constant 0 : index
    %4 = vector.load %arg4[%c0_9, %c0_10, %c0_11, %c0_12, %c0_13] : memref<1x1x2x12x16xbf16, #tpu.memory_space<vmem>>, vector<1x1x2x12x16xbf16>
    %5 = vector.shape_cast %4 : vector<1x1x2x12x16xbf16> to vector<2x12x16xbf16>
    "tpu.trace_start"() <{level = 10 : i32, message = "hnd,hmd->hnm"}> : () -> ()
    %cst = arith.constant dense<0.000000e+00> : vector<2x4x12xf32>
    %6 = tpu.matmul %1, %3, %cst {dimension_numbers = #tpu.dot_dimension_numbers<[2], [2], [1], [1], [0, 0, 0, 1, 1, 1], [0], [0]>} : vector<2x4x16xbf16>, vector<2x12x16xbf16>, vector<2x4x12xf32> -> vector<2x4x12xf32>
    "tpu.trace_stop"() : () -> ()
    %c0_14 = arith.constant 0 : index
    %c0_15 = arith.constant 0 : index
    %c0_16 = arith.constant 0 : index
    %7 = vector.load %arg5[%c0_14, %c0_15, %c0_16] : memref<2x16x48xbf16, #tpu.memory_space<vmem>>, vector<2x16x48xbf16>
    "tpu.trace_start"() <{level = 10 : i32, message = "hnd,hdf->hnf"}> : () -> ()
    %cst_17 = arith.constant dense<0.000000e+00> : vector<2x4x48xf32>
    %8 = tpu.matmul %1, %7, %cst_17 {dimension_numbers = #tpu.dot_dimension_numbers<[2], [1], [1], [2], [0, 0, 0, 1, 1, 2], [0], [0]>} : vector<2x4x16xbf16>, vector<2x16x48xbf16>, vector<2x4x48xf32> -> vector<2x4x48xf32>
    "tpu.trace_stop"() : () -> ()
    %9 = vector.extract_strided_slice %8 {offsets = [0, 0, 0], sizes = [2, 4, 24], strides = [1, 1, 1]} : vector<2x4x48xf32> to vector<2x4x24xf32>
    %10 = vector.extract_strided_slice %8 {offsets = [0, 0, 24], sizes = [2, 4, 24], strides = [1, 1, 1]} : vector<2x4x48xf32> to vector<2x4x24xf32>
    %c0_18 = arith.constant 0 : index
    %c0_19 = arith.constant 0 : index
    %11 = vector.load %arg6[%c0_18, %c0_19] : memref<4x24xf32, #tpu.memory_space<vmem>>, vector<4x24xf32>
    %12 = vector.shape_cast %11 : vector<4x24xf32> to vector<1x4x24xf32>
    %c0_20 = arith.constant 0 : index
    %c0_21 = arith.constant 0 : index
    %13 = vector.load %arg7[%c0_20, %c0_21] : memref<4x24xf32, #tpu.memory_space<vmem>>, vector<4x24xf32>
    %14 = vector.shape_cast %13 : vector<4x24xf32> to vector<1x4x24xf32>
    %15 = vector.broadcast %12 : vector<1x4x24xf32> to vector<2x4x24xf32>
    %16 = arith.mulf %9, %15 : vector<2x4x24xf32>
    %17 = vector.broadcast %14 : vector<1x4x24xf32> to vector<2x4x24xf32>
    %18 = arith.mulf %10, %17 : vector<2x4x24xf32>
    %19 = arith.addf %16, %18 : vector<2x4x24xf32>
    %20 = vector.broadcast %12 : vector<1x4x24xf32> to vector<2x4x24xf32>
    %21 = arith.mulf %10, %20 : vector<2x4x24xf32>
    %22 = vector.broadcast %14 : vector<1x4x24xf32> to vector<2x4x24xf32>
    %23 = arith.mulf %9, %22 : vector<2x4x24xf32>
    %24 = arith.subf %21, %23 : vector<2x4x24xf32>
    %25 = tpu.concatenate %19, %24 in 2 : vector<2x4x24xf32>, vector<2x4x24xf32> -> vector<2x4x48xf32>
    %c0_22 = arith.constant 0 : index
    %c0_23 = arith.constant 0 : index
    %26 = vector.load %arg8[%c0_22, %c0_23] : memref<48x12xf32, #tpu.memory_space<vmem>>, vector<48x12xf32>
    %27 = arith.truncf %26 : vector<48x12xf32> to vector<48x12xbf16>
    %28 = vector.shape_cast %27 : vector<48x12xbf16> to vector<1x48x12xbf16>
    %29 = vector.broadcast %28 : vector<1x48x12xbf16> to vector<2x48x12xbf16>
    %30 = arith.truncf %25 : vector<2x4x48xf32> to vector<2x4x48xbf16>
    "tpu.trace_start"() <{level = 10 : i32, message = "hnf,hfm->hnm"}> : () -> ()
    %cst_24 = arith.constant dense<0.000000e+00> : vector<2x4x12xf32>
    %31 = tpu.matmul %30, %29, %cst_24 {dimension_numbers = #tpu.dot_dimension_numbers<[2], [1], [1], [2], [0, 0, 0, 1, 1, 2], [0], [0]>} : vector<2x4x48xbf16>, vector<2x48x12xbf16>, vector<2x4x12xf32> -> vector<2x4x12xf32>
    "tpu.trace_stop"() : () -> ()
    %32 = arith.addf %6, %31 : vector<2x4x12xf32>
    %cst_25 = arith.constant dense<0xFF800000> : vector<2x4xf32>
    %33 = vector.multi_reduction <maximumf>, %32, %cst_25 [2] : vector<2x4x12xf32> to vector<2x4xf32>
    %34 = vector.shape_cast %33 : vector<2x4xf32> to vector<2x4x1xf32>
    %35 = vector.broadcast %34 : vector<2x4x1xf32> to vector<2x4x12xf32>
    %36 = arith.subf %32, %35 : vector<2x4x12xf32>
    %37 = math.exp %36 : vector<2x4x12xf32>
    %cst_26 = arith.constant dense<0.000000e+00> : vector<2x4xf32>
    %38 = vector.multi_reduction <add>, %37, %cst_26 [2] : vector<2x4x12xf32> to vector<2x4xf32>
    %39 = vector.shape_cast %38 : vector<2x4xf32> to vector<2x4x1xf32>
    %40 = tpu.reciprocal %39 {approx = true} : vector<2x4x1xf32> -> vector<2x4x1xf32>
    %41 = vector.broadcast %40 : vector<2x4x1xf32> to vector<2x4x12xf32>
    %42 = arith.mulf %37, %41 : vector<2x4x12xf32>
    %43 = arith.truncf %42 : vector<2x4x12xf32> to vector<2x4x12xbf16>
    "tpu.trace_start"() <{level = 10 : i32, message = "hnm,hmd->hnd"}> : () -> ()
    %cst_27 = arith.constant dense<0.000000e+00> : vector<2x4x16xf32>
    %44 = tpu.matmul %43, %5, %cst_27 {dimension_numbers = #tpu.dot_dimension_numbers<[2], [1], [1], [2], [0, 0, 0, 1, 1, 2], [0], [0]>} : vector<2x4x12xbf16>, vector<2x12x16xbf16>, vector<2x4x16xf32> -> vector<2x4x16xf32>
    "tpu.trace_stop"() : () -> ()
    %45 = arith.truncf %44 : vector<2x4x16xf32> to vector<2x4x16xbf16>
    %c0_28 = arith.constant 0 : index
    %c0_29 = arith.constant 0 : index
    %c0_30 = arith.constant 0 : index
    %c0_31 = arith.constant 0 : index
    %c0_32 = arith.constant 0 : index
    %46 = vector.load %arg9[%c0_28, %c0_29, %c0_30, %c0_31, %c0_32] : memref<1x1x2x4x16xbf16, #tpu.memory_space<vmem>>, vector<1x1x2x4x16xbf16>
    %47 = vector.shape_cast %46 : vector<1x1x2x4x16xbf16> to vector<2x4x16xbf16>
    %48 = vector.shape_cast %45 : vector<2x4x16xbf16> to vector<1x1x2x4x16xbf16>
    tpu.vector_store %arg9[%c0_28, %c0_29, %c0_30, %c0_31, %c0_32], %48 {strides = array<i32>} : memref<1x1x2x4x16xbf16, #tpu.memory_space<vmem>>, vector<1x1x2x4x16xbf16>,
    return
  }
  func.func @transform_0(%arg0: i32, %arg1: i32) -> (i32, i32, i32, i32, i32) {
    %c0_i32 = arith.constant 0 : i32
    %c0_i32_0 = arith.constant 0 : i32
    %c0_i32_1 = arith.constant 0 : i32
    %c0_i32_2 = arith.constant 0 : i32
    return %arg0, %arg1, %c0_i32, %c0_i32_0, %c0_i32_1 : i32, i32, i32, i32, i32
  }
  func.func @transform_1(%arg0: i32, %arg1: i32) -> (i32, i32, i32, i32, i32) {
    %c0_i32 = arith.constant 0 : i32
    %c0_i32_0 = arith.constant 0 : i32
    %c0_i32_1 = arith.constant 0 : i32
    %c0_i32_2 = arith.constant 0 : i32
    return %arg0, %arg1, %c0_i32, %c0_i32_0, %c0_i32_1 : i32, i32, i32, i32, i32
  }
  func.func @transform_2(%arg0: i32, %arg1: i32) -> (i32, i32, i32, i32, i32) {
    %c0_i32 = arith.constant 0 : i32
    %c0_i32_0 = arith.constant 0 : i32
    %c0_i32_1 = arith.constant 0 : i32
    %c0_i32_2 = arith.constant 0 : i32
    return %arg0, %arg1, %c0_i32, %c0_i32_0, %c0_i32_1 : i32, i32, i32, i32, i32
  }
  func.func @transform_3(%arg0: i32, %arg1: i32) -> (i32, i32, i32) {
    %c0_i32 = arith.constant 0 : i32
    %c0_i32_0 = arith.constant 0 : i32
    %c0_i32_1 = arith.constant 0 : i32
    %c0_i32_2 = arith.constant 0 : i32
    return %c0_i32, %c0_i32_0, %c0_i32_1 : i32, i32, i32
  }
  func.func @transform_4(%arg0: i32, %arg1: i32) -> (i32, i32) {
    %c0_i32 = arith.constant 0 : i32
    %c0_i32_0 = arith.constant 0 : i32
    %c0_i32_1 = arith.constant 0 : i32
    return %c0_i32, %c0_i32_0 : i32, i32
  }
  func.func @transform_5(%arg0: i32, %arg1: i32) -> (i32, i32) {
    %c0_i32 = arith.constant 0 : i32
    %c0_i32_0 = arith.constant 0 : i32
    %c0_i32_1 = arith.constant 0 : i32
    return %c0_i32, %c0_i32_0 : i32, i32
  }
  func.func @transform_6(%arg0: i32, %arg1: i32) -> (i32, i32) {
    %c0_i32 = arith.constant 0 : i32
    %c0_i32_0 = arith.constant 0 : i32
    %c0_i32_1 = arith.constant 0 : i32
    return %c0_i32, %c0_i32_0 : i32, i32
  }
  func.func @transform_7(%arg0: i32, %arg1: i32) -> (i32, i32, i32, i32, i32) {
    %c0_i32 = arith.constant 0 : i32
    %c0_i32_0 = arith.constant 0 : i32
    %c0_i32_1 = arith.constant 0 : i32
    %c0_i32_2 = arith.constant 0 : i32
    return %arg0, %arg1, %c0_i32, %c0_i32_0, %c0_i32_1 : i32, i32, i32, i32, i32
  }
}

module attributes {stable_mosaic.version = 11 : i64} {
  func.func @_matmul_kernel(%arg0: i32, %arg1: i32, %arg2: memref<16x32xbf16, #tpu.memory_space<vmem>>, %arg3: memref<32x32xbf16, #tpu.memory_space<vmem>>, %arg4: memref<16x32xf32, #tpu.memory_space<vmem>>) attributes {dimension_semantics = [#tpu.dimension_semantics<parallel>, #tpu.dimension_semantics<parallel>], iteration_bounds = array<i64: 1, 1>, scalar_prefetch = 0 : i64, scratch_operands = 0 : i64, tpu.core_type = #tpu.core_type<tc>, window_params = [{transform_indices = @transform_0, window_bounds = array<i64: 16, 32>}, {transform_indices = @transform_1, window_bounds = array<i64: 32, 32>}, {transform_indices = @transform_2, window_bounds = array<i64: 16, 32>}]} {
    %c0 = arith.constant 0 : index
    %c0_0 = arith.constant 0 : index
    %0 = vector.load %arg2[%c0, %c0_0] : memref<16x32xbf16, #tpu.memory_space<vmem>>, vector<16x32xbf16>
    %c0_1 = arith.constant 0 : index
    %c0_2 = arith.constant 0 : index
    %1 = vector.load %arg3[%c0_1, %c0_2] : memref<32x32xbf16, #tpu.memory_space<vmem>>, vector<32x32xbf16>
    %cst = arith.constant dense<0.000000e+00> : vector<16x32xf32>
    %2 = tpu.matmul %0, %1, %cst {dimension_numbers = #tpu.dot_dimension_numbers<[1], [0], [0], [1], [0, 0, 1, 1], [], []>} : vector<16x32xbf16>, vector<32x32xbf16>, vector<16x32xf32> -> vector<16x32xf32>
    %c0_3 = arith.constant 0 : index
    %c0_4 = arith.constant 0 : index
    %3 = vector.load %arg4[%c0_3, %c0_4] : memref<16x32xf32, #tpu.memory_space<vmem>>, vector<16x32xf32>
    tpu.vector_store %arg4[%c0_3, %c0_4], %2 {strides = array<i32>} : memref<16x32xf32, #tpu.memory_space<vmem>>, vector<16x32xf32>,
    return
  }
  func.func @transform_0(%arg0: i32, %arg1: i32) -> (i32, i32) {
    %c0_i32 = arith.constant 0 : i32
    %c0_i32_0 = arith.constant 0 : i32
    return %arg0, %c0_i32 : i32, i32
  }
  func.func @transform_1(%arg0: i32, %arg1: i32) -> (i32, i32) {
    %c0_i32 = arith.constant 0 : i32
    %c0_i32_0 = arith.constant 0 : i32
    return %c0_i32, %arg1 : i32, i32
  }
  func.func @transform_2(%arg0: i32, %arg1: i32) -> (i32, i32) {
    %c0_i32 = arith.constant 0 : i32
    return %arg0, %arg1 : i32, i32
  }
}

</mosaic_0001>

<bundles_post_ra>
// kernel: decoder_forward.18
= control target key start
LH: loop header
LB: loop body
LE: loop exit
PB: predicated region body
PF: predicated region fallthrough
CT: control target
= control target key end

     0   :  { %vm23_vm0 = vcmask 261120   ;;  %v171_v7 = vmov 0.0   ;;  %vm172_vm1 = vmmov 0   ;;  %vm133_vm6 = vcmask 781312   ;;  %s218_s0 = inlined_call_operand.vmem [shape: f32[16,32], index: 0, kind: input, shape index: {}]   ;;  %s219_s2 = inlined_call_operand.vmem [shape: bf16[32,96], index: 2, kind: input, shape index: {}]   ;;  %s220_s1 = inlined_call_operand.vmem [shape: f32[1,32], index: 1, kind: input, shape index: {}]   ;;  %s221_s3 = inlined_call_operand.vmem [shape: bf16[16,96], index: 3, kind: output, shape index: {}]  }
   0x1   :  { %v19_v0 = vld [vmem:[%s218_s0] sm:$0xff]  ;;  %v20_v1 = vld [vmem:[%s218_s0 + $0x8] sm:$0xff]  ;;  %151 = vmatprep.subr.bf16.mxu0 %v171_v7  ;;  %155 = vmatprep.mubr.msk.bf16.mxu0 %vm172_vm1, %v171_v7 }
   0x2   :  { %v21_v2 = vmul.f32 %v19_v0, %v19_v0  ;;  %v22_v3 = vmul.f32 %v20_v1, %v20_v1  ;;  %v161_v6 = vld [vmem:[%s219_s2] sm:$0xff]   ;;  %v162_v8 = vld [vmem:[%s219_s2 + $0x8] sm:$0xff]  }
   0x3   :  { %152 = vmatpush3.bf16.msra.mxu0 %v161_v6  ;;  %v140_v28 = vld [vmem:[%s220_s1] ss:$0 sm:$0xff] }
   0x4   :  { %v24_v4 = vsel %vm23_vm0, %v21_v2, 0.0  ;;  %v27_v5 = vsel %vm23_vm0, %v22_v3, 0.0  ;;  %153 = vmatprep.subr.bf16.mxu0 %v171_v7 }
   0x5   :  { %25 = vadd.xlane.f32.xlu0 %v24_v4 }
   0x7   :  { %154 = vmatpush3.bf16.msra.mxu0 %v162_v8 }
   0x9   :  { %28 = vadd.xlane.f32.xlu0 %v27_v5 }
  0x92   :  { %v26_v9 = vpop.xlane.xlu0 %25 }
  0x93   :  { %163 = vrsqrt.f32 %v26_v9  ;;  %vm32_vm2 = vcmp.eq.f32.partialorder %v26_v9, inf  ;;  %v35_v13 = vand.u32 2147483648, %v26_v9  ;;  %vm34_vm3 = vcmp.eq.f32.partialorder %v26_v9, 0.0 }
  0x96   :  { %v29_v10 = vpop.xlane.xlu0 %28 }
  0x97   :  { %165 = vrsqrt.f32 %v29_v10  ;;  %vm39_vm4 = vcmp.eq.f32.partialorder %v29_v10, inf  ;;  %v42_v19 = vand.u32 2147483648, %v29_v10  ;;  %vm41_vm5 = vcmp.eq.f32.partialorder %v29_v10, 0.0 }
  0x9d   :  { %v164_v11 = vpop.eup %163 }
  0x9e   :  { %v31_v12 = vmul.f32 %v164_v11, %v26_v9 }
  0xa0   :  { %v33_v14 = vsel %vm32_vm2, %v26_v9, %v31_v12 }
  0xa1   :  { %v166_v15 = vpop.eup %165  ;;  %v36_v16 = vsel %vm34_vm3, %v35_v13, %v33_v14 }
  0xa2   :  { %v44_v17 = vmul.f32 0.17677669, %v36_v16  ;;  %v38_v18 = vmul.f32 %v166_v15, %v29_v10 }
  0xa4   :  { %v47_v20 = vadd.f32 1e-08, %v44_v17  ;;  %v40_v21 = vsel %vm39_vm4, %v29_v10, %v38_v18 }
  0xa5   :  { %v43_v22 = vsel %vm41_vm5, %v42_v19, %v40_v21 }
  0xa6   :  { %167 = vrcp.f32 %v47_v20  ;;  %v45_v23 = vmul.f32 0.17677669, %v43_v22 }
  0xa8   :  { %v48_v24 = vadd.f32 1e-08, %v45_v23 }
  0xaa   :  { %169 = vrcp.f32 %v48_v24 }
  0xb0   :  { %v168_v25 = vpop.eup %167 }
  0xb1   :  { %v50_v26 = vmul.f32 %v168_v25, %v19_v0 }
  0xb3   :  { %v59_v30 = vmul.f32 %v140_v28, %v50_v26 }
  0xb4   :  { %v170_v27 = vpop.eup %169 }
  0xb5   :  { %v52_v29 = vmul.f32 %v170_v27, %v20_v1 }
  0xb7   :  { %v60_v31 = vmul.f32 %v140_v28, %v52_v29 }
  0xb9   :  { %v61_v32 = vpack.c.bf16 %v60_v31, %v59_v30 }
  0xbb   :  { %62 = vst.msk [vmem:[#allocation2] sm:$0xff] %vm23_vm0, %v61_v32 }
  0xc2   :  { %v63_v33 = vld [vmem:[#allocation2] sm:$0xff] }
  0xc3   :  { %156 = vmatmul.mubr.msk.bf16.vlgmr.msra.gmra.mrb[0].mxu0 %vm23_vm0, %v63_v33 }
 0x196   :  { %v118_v34 = vpop.f32.mrb[0].mxu0 }
 0x197   :  { %v146_v35 = vpack.c.bf16 %v118_v34, %v118_v34  ;;  %v157_v36 = vpop.f32.mrb[1].mxu0 }
 0x198   :  { %v121_v37 = vpop.f32.mrb[2].mxu0 }
 0x199   :  { %134 = vst.msk [vmem:[%s221_s3] sm:$0xf] %vm133_vm6, %v146_v35  ;;  %v147_v38 = vpack.c.bf16 %v121_v37, %v121_v37  ;;  %v158_v39 = vpop.f32.mrb[3].mxu0 }
 0x19b   :  { %135 = vst.msk [vmem:[%s221_s3 + $0x4] sm:$0xf] %vm133_vm6, %v147_v38 }

// kernel: decoder_forward.20
= control target key start
LH: loop header
LB: loop body
LE: loop exit
PB: predicated region body
PF: predicated region fallthrough
CT: control target
= control target key end

     0   :  { %v113_v0 = vmov 0.0   ;;  %vm114_vm0 = vmmov 0   ;;  %vm38_vm1 = vcmask 261120   ;;  %s156_s1 = inlined_call_operand.vmem [shape: bf16[32,32], index: 1, kind: input, shape index: {}]   ;;  %s157_s0 = inlined_call_operand.vmem [shape: bf16[16,32], index: 0, kind: input, shape index: {}]   ;;  %s158_s2 = inlined_call_operand.vmem [shape: f32[16,32], index: 2, kind: input, shape index: {}]   ;;  %s159_s3 = inlined_call_operand.vmem [shape: f32[16,32], index: 3, kind: output, shape index: {}]  }
   0x1   :  { %100 = vmatprep.subr.bf16.mxu0 %v113_v0  ;;  %v110_v1 = vld [vmem:[%s156_s1] sm:$0xff]   ;;  %104 = vmatprep.mubr.msk.bf16.mxu0 %vm114_vm0, %v113_v0  ;;  %v111_v2 = vld [vmem:[%s156_s1 + $0x8] sm:$0xff]  }
   0x2   :  { %101 = vmatpush3.bf16.msra.mxu0 %v110_v1  ;;  %v112_v3 = vld [vmem:[%s157_s0] sm:$0xff]   ;;  %v84_v6 = vld [vmem:[%s158_s2 + $0x8] sm:$0xff] }
   0x3   :  { %102 = vmatprep.subr.bf16.mxu0 %v113_v0  ;;  %v83_v4 = vld [vmem:[%s158_s2] sm:$0xff] }
   0x6   :  { %103 = vmatpush3.bf16.msra.mxu0 %v111_v2 }
   0x9   :  { %105 = vmatmul.mubr.msk.bf16.vlgmr.msra.gmra.mrb[0].mxu0 %vm38_vm1, %v112_v3 }
  0xdc   :  { %v76_v5 = vpop.f32.mrb[0].mxu0 }
  0xdd   :  { %v85_v7 = vadd.f32 %v83_v4, %v76_v5  ;;  %v106_v8 = vpop.f32.mrb[1].mxu0 }
  0xde   :  { %v79_v9 = vpop.f32.mrb[2].mxu0 }
  0xdf   :  { %87 = vst.msk [vmem:[%s159_s3] sm:$0xff] %vm38_vm1, %v85_v7  ;;  %v86_v10 = vadd.f32 %v84_v6, %v79_v9  ;;  %v107_v11 = vpop.f32.mrb[3].mxu0 }
  0xe1   :  { %88 = vst.msk [vmem:[%s159_s3 + $0x8] sm:$0xff] %vm38_vm1, %v86_v10 }

// kernel: decoder_forward.21
= control target key start
LH: loop header
LB: loop body
LE: loop exit
PB: predicated region body
PF: predicated region fallthrough
CT: control target
= control target key end

     0   :  { %vm26_vm0 = vcmask 261120   ;;  %v204_v7 = vmov 0.0   ;;  %vm205_vm1 = vmmov 0   ;;  %vm161_vm6 = vcmask 519168   ;;  %s259_s0 = inlined_call_operand.vmem [shape: f32[16,32], index: 0, kind: input, shape index: {}]   ;;  %s260_s2 = inlined_call_operand.vmem [shape: bf16[32,64], index: 2, kind: input, shape index: {}]   ;;  %s261_s1 = inlined_call_operand.vmem [shape: f32[1,32], index: 1, kind: input, shape index: {}]   ;;  %s262_s3 = inlined_call_operand.vmem [shape: f32[1,64], index: 3, kind: input, shape index: {}]   ;;  %s263_s4 = inlined_call_operand.vmem [shape: bf16[16,64], index: 4, kind: output, shape index: {}]  }
   0x1   :  { %v22_v0 = vld [vmem:[%s259_s0] sm:$0xff]  ;;  %v23_v1 = vld [vmem:[%s259_s0 + $0x8] sm:$0xff]  ;;  %180 = vmatprep.subr.bf16.mxu0 %v204_v7  ;;  %184 = vmatprep.mubr.msk.bf16.mxu0 %vm205_vm1, %v204_v7 }
   0x2   :  { %v24_v2 = vmul.f32 %v22_v0, %v22_v0  ;;  %v25_v3 = vmul.f32 %v23_v1, %v23_v1  ;;  %v190_v6 = vld [vmem:[%s260_s2] sm:$0xff]   ;;  %v191_v8 = vld [vmem:[%s260_s2 + $0x8] sm:$0xff]  }
   0x3   :  { %181 = vmatpush3.bf16.msra.mxu0 %v190_v6  ;;  %v168_v28 = vld [vmem:[%s261_s1] ss:$0 sm:$0xff] }
   0x4   :  { %v27_v4 = vsel %vm26_vm0, %v24_v2, 0.0  ;;  %v30_v5 = vsel %vm26_vm0, %v25_v3, 0.0  ;;  %182 = vmatprep.subr.bf16.mxu0 %v204_v7  ;;  %v169_v34 = vld [vmem:[%s262_s3] ss:$0 sm:$0xff] }
   0x5   :  { %28 = vadd.xlane.f32.xlu0 %v27_v4 }
   0x7   :  { %183 = vmatpush3.bf16.msra.mxu0 %v191_v8 }
   0x9   :  { %31 = vadd.xlane.f32.xlu0 %v30_v5 }
  0x92   :  { %v29_v9 = vpop.xlane.xlu0 %28 }
  0x93   :  { %192 = vrsqrt.f32 %v29_v9  ;;  %vm35_vm2 = vcmp.eq.f32.partialorder %v29_v9, inf  ;;  %v38_v13 = vand.u32 2147483648, %v29_v9  ;;  %vm37_vm3 = vcmp.eq.f32.partialorder %v29_v9, 0.0 }
  0x96   :  { %v32_v10 = vpop.xlane.xlu0 %31 }
  0x97   :  { %194 = vrsqrt.f32 %v32_v10  ;;  %vm42_vm4 = vcmp.eq.f32.partialorder %v32_v10, inf  ;;  %v45_v19 = vand.u32 2147483648, %v32_v10  ;;  %vm44_vm5 = vcmp.eq.f32.partialorder %v32_v10, 0.0 }
  0x9d   :  { %v193_v11 = vpop.eup %192 }
  0x9e   :  { %v34_v12 = vmul.f32 %v193_v11, %v29_v9 }
  0xa0   :  { %v36_v14 = vsel %vm35_vm2, %v29_v9, %v34_v12 }
  0xa1   :  { %v195_v15 = vpop.eup %194  ;;  %v39_v16 = vsel %vm37_vm3, %v38_v13, %v36_v14 }
  0xa2   :  { %v47_v17 = vmul.f32 0.17677669, %v39_v16  ;;  %v41_v18 = vmul.f32 %v195_v15, %v32_v10 }
  0xa4   :  { %v50_v20 = vadd.f32 1e-08, %v47_v17  ;;  %v43_v21 = vsel %vm42_vm4, %v32_v10, %v41_v18 }
  0xa5   :  { %v46_v22 = vsel %vm44_vm5, %v45_v19, %v43_v21 }
  0xa6   :  { %196 = vrcp.f32 %v50_v20  ;;  %v48_v23 = vmul.f32 0.17677669, %v46_v22 }
  0xa8   :  { %v51_v24 = vadd.f32 1e-08, %v48_v23 }
  0xaa   :  { %198 = vrcp.f32 %v51_v24 }
  0xb0   :  { %v197_v25 = vpop.eup %196 }
  0xb1   :  { %v53_v26 = vmul.f32 %v197_v25, %v22_v0 }
  0xb3   :  { %v62_v30 = vmul.f32 %v168_v28, %v53_v26 }
  0xb4   :  { %v199_v27 = vpop.eup %198 }
  0xb5   :  { %v55_v29 = vmul.f32 %v199_v27, %v23_v1 }
  0xb7   :  { %v63_v31 = vmul.f32 %v168_v28, %v55_v29 }
  0xb9   :  { %v64_v32 = vpack.c.bf16 %v63_v31, %v62_v30 }
  0xbb   :  { %65 = vst.msk [vmem:[#allocation2] sm:$0xff] %vm26_vm0, %v64_v32 }
  0xc2   :  { %v66_v33 = vld [vmem:[#allocation2] sm:$0xff] }
  0xc3   :  { %185 = vmatmul.mubr.msk.bf16.vlgmr.msra.gmra.mrb[0].mxu0 %vm26_vm0, %v66_v33 }
 0x196   :  { %v128_v35 = vpop.f32.mrb[0].mxu0 }
 0x197   :  { %v129_v36 = vadd.f32 %v169_v34, %v128_v35  ;;  %v186_v37 = vpop.f32.mrb[1].mxu0 }
 0x198   :  { %v131_v38 = vpop.f32.mrb[2].mxu0 }
 0x199   :  { %v137_v39 = vmul.f32 0.044715, %v129_v36  ;;  %v132_v40 = vadd.f32 %v169_v34, %v131_v38  ;;  %v187_v41 = vpop.f32.mrb[3].mxu0  ;;  %v135_v52 = vmul.f32 0.5, %v129_v36 }
 0x19b   :  { %v139_v42 = vmul.f32 %v137_v39, %v129_v36  ;;  %v138_v43 = vmul.f32 0.044715, %v132_v40  ;;  %v136_v56 = vmul.f32 0.5, %v132_v40 }
 0x19d   :  { %v141_v44 = vmul.f32 %v139_v42, %v129_v36  ;;  %v140_v45 = vmul.f32 %v138_v43, %v132_v40 }
 0x19f   :  { %v143_v46 = vadd.f32 %v141_v44, %v129_v36  ;;  %v142_v47 = vmul.f32 %v140_v45, %v132_v40 }
 0x1a1   :  { %v145_v48 = vmul.f32 0.7978846, %v143_v46  ;;  %v144_v49 = vadd.f32 %v142_v47, %v132_v40 }
 0x1a3   :  { %200 = vtanh.f32 %v145_v48  ;;  %v146_v50 = vmul.f32 0.7978846, %v144_v49 }
 0x1a5   :  { %202 = vtanh.f32 %v146_v50 }
 0x1ad   :  { %v201_v51 = vpop.eup %200 }
 0x1ae   :  { %v149_v53 = vadd.f32 1.0, %v201_v51 }
 0x1af   :  { %v203_v54 = vpop.eup %202 }
 0x1b0   :  { %v151_v55 = vmul.f32 %v149_v53, %v135_v52  ;;  %v150_v57 = vadd.f32 1.0, %v203_v54 }
 0x1b2   :  { %v175_v58 = vpack.c.bf16 %v151_v55, %v151_v55  ;;  %v152_v59 = vmul.f32 %v150_v57, %v136_v56 }
 0x1b4   :  { %162 = vst.msk [vmem:[%s263_s4] sm:$0xf] %vm161_vm6, %v175_v58  ;;  %v176_v60 = vpack.c.bf16 %v152_v59, %v152_v59 }
 0x1b6   :  { %163 = vst.msk [vmem:[%s263_s4 + $0x4] sm:$0xf] %vm161_vm6, %v176_v60 }

// kernel: decoder_forward.19
= control target key start
LH: loop header
LB: loop body
LE: loop exit
PB: predicated region body
PF: predicated region fallthrough
CT: control target
= control target key end

     0   :  { %s1042_s24 = smov 0   ;;  %s1149_s0 = inlined_call_operand.vmem [shape: bf16[2,2,8,16], index: 0, kind: input, shape index: {}]   ;;  %s1150_s1 = inlined_call_operand.vmem [shape: bf16[2,2,8,16], index: 1, kind: input, shape index: {}]   ;;  %s1151_s2 = inlined_call_operand.vmem [shape: bf16[2,2,8,16], index: 2, kind: input, shape index: {}]   ;;  %s1152_s3 = inlined_call_operand.vmem [shape: bf16[2,16,32], index: 3, kind: input, shape index: {}]   ;;  %s1153_s4 = inlined_call_operand.vmem [shape: f32[8,16], index: 4, kind: input, shape index: {}]   ;;  %s1154_s5 = inlined_call_operand.vmem [shape: f32[8,16], index: 5, kind: input, shape index: {}]   ;;  %s1155_s6 = inlined_call_operand.vmem [shape: f32[32,8], index: 6, kind: input, shape index: {}]   ;;  %s1156_s7 = inlined_call_operand.vmem [shape: bf16[2,2,8,16], index: 7, kind: output, shape index: {}]  }
   0x1 LB: > { %s861_s25 = sadd.s32 4294967295, %s996_s24   ;;  %p865_p0 = scmp.ge.s32.totalorder %s996_s24, 1  ;;  %s996_s24 = sphi %s1042_s24, %s17_s24  }
   0x2   : > { %p257_p1 = scmp.lt.s32.totalorder %s996_s24, 3 }
   0x4   : > { %p258_p2 = pnand %p865_p0, %p257_p1 }
   0x5   : > { %v980_v0 = vld [vmem:[%s1152_s3] sm:$0xff] (!%p258_p2)   ;;  %v998_v1 = vmov (!%p258_p2), 0.0   ;;  %v981_v2 = vld [vmem:[%s1152_s3 + $0x8] sm:$0xff] (!%p258_p2)   ;;  %vm999_vm0 = vmmov (!%p258_p2), 0   ;;  %p299_p3 = scmp.lt.s32.totalorder (!%p258_p2), %s861_s25, 1  ;;  %s1000_s9 = smov (!%p258_p2), 16   ;;  %v650_v47 = vlaneseq (!%p258_p2) }
   0x6   : > { %261 = sbr.rel (%p258_p2) target bundleno = 1115 (0x45b), region = 48  ;;  %908 = vmatprep.subr.bf16.mxu0 (!%p258_p2), %v998_v1  ;;  %914 = vmatprep.subr.bf16.mxu1 (!%p258_p2), %v998_v1  ;;  %v430_v3 = vld [vmem:[%s1154_s5] sm:$0xff] (!%p258_p2)  ;;  %vm336_vm1 = vcmask (!%p258_p2), 130048   ;;  %v470_v8 = vld [vmem:[%s1155_s6 + $0x8] sm:$0xff] (!%p258_p2)  ;;  %v471_v10 = vld [vmem:[%s1155_s6 + $0x10] sm:$0xff] (!%p258_p2)  ;;  %vm477_vm2 = vcmask (!%p258_p2), 261120  }
   0x7   : > { %909 = vmatpush3.bf16.msra.mxu0 (!%p258_p2), %v980_v0  ;;  %910 = vmatprep.mubr.msk.bf16.mxu0 (!%p258_p2), %vm999_vm0, %v998_v1  ;;  %v429_v4 = vld [vmem:[%s1153_s4] sm:$0xff] (!%p258_p2)  ;;  %v472_v11 = vld [vmem:[%s1155_s6 + $0x18] sm:$0xff] (!%p258_p2)  ;;  %v651_v48 = vshrl.u32 (!%p258_p2), %v650_v47, 7  ;;  %v653_v49 = vand.u32 (!%p258_p2), 127, %v650_v47  ;;  %vm659_vm4 = vcmask (!%p258_p2), 64512   ;;  %vm687_vm5 = vcmask (!%p258_p2), 1043456  }
   0x8   : > { %915 = vmatpush3.bf16.msra.mxu1 (!%p258_p2), %v981_v2  ;;  %916 = vmatprep.mubr.msk.bf16.mxu1 (!%p258_p2), %vm999_vm0, %v998_v1  ;;  %v469_v7 = vld [vmem:[%s1155_s6] sm:$0xff] (!%p258_p2)  ;;  %v474_v12 = vpack.c.bf16 (!%p258_p2), %v472_v11, %v471_v10  ;;  %vm779_vm6 = vcmask (!%p258_p2), 125952  }
   0x9   : > { %434 = vrot.lane.b32.xlu0 (!%p258_p2), %v430_v3, %s1000_s9  ;;  %920 = vmatprep.subr.bf16.mxu0 (!%p258_p2), %v998_v1  ;;  %v473_v9 = vpack.c.bf16 (!%p258_p2), %v470_v8, %v469_v7  ;;  %vm654_vm3 = vcmp.gt.s32.totalorder (!%p258_p2), %v653_v49, %v651_v48 }
   0xa   : > { %928 = vmatprep.subr.bf16.mxu1 (!%p258_p2), %v998_v1 }
   0xd   : > { %s1158_s25 = smov (!%p299_p3, %s861_s25), 1  ;;  %450 = vrot.lane.b32.xlu0 %v429_v4, %s1000_s9 }
   0xe   : > { %s1071_s12 = sshll.u32 %s1158_s25, 3  ;;  %s1001_s25 = smov 112  }
   0xf   : > { %s303_s15 = scalar_lea.vmem %s1149_s0, %s1071_s12  ;;  %s308_s28 = scalar_lea.vmem %s1150_s1, %s1071_s12 }
  0x10   : > { %v1077_v5 = vld [vmem:[%s303_s15] sm:$0xf]  ;;  %v1079_v6 = vld [vmem:[%s303_s15 + $0x4] sm:$0xf]  ;;  %s313_s8 = scalar_lea.vmem %s1151_s2, %s1071_s12  ;;  %s318_s11 = scalar_lea.vmem %s1156_s7, %s1071_s12 }
  0x11   : > { %911 = vmatmul.mubr.msk.bf16.vlgmr.msra.gmra.mrb[0].mxu0 %vm336_vm1, %v1077_v5  ;;  %917 = vmatmul.mubr.msk.bf16.vlgmr.msra.gmra.mrb[0].mxu1 %vm336_vm1, %v1079_v6  ;;  %v322_v33 = vld [vmem:[%s308_s28] sm:$0xf]  ;;  %v323_v43 = vld [vmem:[%s308_s28 + $0x4] sm:$0xf] }
  0x12   : > { %924 = vmatprep.mubr.msk.bf16.mxu0 %vm999_vm0, %v998_v1  ;;  %932 = vmatprep.mubr.msk.bf16.mxu1 %vm999_vm0, %v998_v1  ;;  %v565_v37 = vsel %vm336_vm1, %v322_v33, 0  ;;  %v608_v46 = vsel %vm336_vm1, %v323_v43, 0  ;;  %v324_v8 = vld [vmem:[%s313_s8] sm:$0xf]  ;;  %v325_v10 = vld [vmem:[%s313_s8 + $0x4] sm:$0xf] }
  0x13   : > { %921 = vmatpush3.bf16.msra.mxu0 %v473_v9  ;;  %929 = vmatpush3.bf16.msra.mxu1 %v473_v9  ;;  %v689_v9 = vsel %vm687_vm5, %v324_v8, 0  ;;  %v735_v11 = vsel %vm687_vm5, %v325_v10, 0 }
  0x14   : > { %922 = vmatprep.subr.bf16.mxu0 %v998_v1  ;;  %930 = vmatprep.subr.bf16.mxu1 %v998_v1 }
  0x17   : > { %923 = vmatpush3.bf16.msra.mxu0 %v474_v12  ;;  %931 = vmatpush3.bf16.msra.mxu1 %v474_v12 }
  0x18   : > { %936 = vmatprep.subr.bf16.mxu0 %v998_v1  ;;  %942 = vmatprep.subr.bf16.mxu1 %v998_v1 }
  0x7b   : > { %v435_v13 = vpop.permute.xlu0 %434 }
  0x7f   : > { %v451_v26 = vpop.permute.xlu0 %450 }
  0xe4   : > { %v374_v14 = vpop.f32.mrb[0].mxu0  ;;  %v423_v15 = vpop.f32.mrb[0].mxu1 }
  0xe5   : > { %v912_v16 = vpop.f32.mrb[1].mxu0  ;;  %v918_v17 = vpop.f32.mrb[1].mxu1  ;;  %v455_v18 = vmul.f32 %v430_v3, %v374_v14  ;;  %v437_v19 = vmul.f32 %v435_v13, %v374_v14  ;;  %v438_v24 = vmul.f32 %v435_v13, %v423_v15  ;;  %v456_v25 = vmul.f32 %v430_v3, %v423_v15 }
  0xe6   : > { %v377_v20 = vpop.f32.mrb[2].mxu0  ;;  %v426_v21 = vpop.f32.mrb[2].mxu1  ;;  %v453_v27 = vmul.f32 %v451_v26, %v374_v14  ;;  %v431_v28 = vmul.f32 %v429_v4, %v374_v14  ;;  %v432_v38 = vmul.f32 %v429_v4, %v423_v15  ;;  %v454_v39 = vmul.f32 %v451_v26, %v423_v15 }
  0xe7   : > { %459 = vrot.lane.b32.xlu0 %v455_v18, %s1000_s9  ;;  %441 = vrot.lane.b32.xlu1 %v437_v19, %s1001_s25  ;;  %v913_v22 = vpop.f32.mrb[3].mxu0  ;;  %v919_v23 = vpop.f32.mrb[3].mxu1 }
  0xeb   : > { %443 = vrot.lane.b32.xlu1 %v438_v24, %s1001_s25 }
  0xef   : > { %461 = vrot.lane.b32.xlu1 %v456_v25, %s1000_s9 }
 0x159   : > { %v460_v29 = vpop.permute.xlu0 %459  ;;  %v442_v30 = vpop.permute.xlu1 %441 }
 0x15a   : > { %v465_v31 = vsub.f32 %v453_v27, %v460_v29  ;;  %v447_v32 = vadd.f32 %v442_v30, %v431_v28 }
 0x15c   : > { %v467_v34 = vsel %vm336_vm1, %v447_v32, %v465_v31 }
 0x15d   : > { %v475_v35 = vpack.c.bf16 %v467_v34, %v467_v34  ;;  %v444_v36 = vpop.permute.xlu1 %443 }
 0x15e   : > { %v448_v41 = vadd.f32 %v444_v36, %v432_v38 }
 0x15f   : > { %925 = vmatmul.mubr.msk.bf16.vlgmr.msra.gmra.mrb[4].mxu0 %vm477_vm2, %v475_v35 }
 0x160   : > { %937 = vmatpush3.bf16.xpose.msra.mxu0 %v565_v37  ;;  %938 = vmatprep.mubr.msk.bf16.mxu0 %vm999_vm0, %v998_v1 }
 0x161   : > { %v462_v40 = vpop.permute.xlu1 %461  ;;  %948 = vmatprep.subr.bf16.mxu0 %v998_v1 }
 0x162   : > { %v466_v42 = vsub.f32 %v454_v39, %v462_v40 }
 0x164   : > { %v468_v44 = vsel %vm336_vm1, %v448_v41, %v466_v42 }
 0x165   : > { %v476_v45 = vpack.c.bf16 %v468_v44, %v468_v44 }
 0x167   : > { %933 = vmatmul.mubr.msk.bf16.vlgmr.msra.gmra.mrb[4].mxu1 %vm477_vm2, %v476_v45 }
 0x168   : > { %943 = vmatpush3.bf16.xpose.msra.mxu1 %v608_v46  ;;  %944 = vmatprep.mubr.msk.bf16.mxu1 %vm999_vm0, %v998_v1 }
 0x169   : > { %954 = vmatprep.subr.bf16.mxu1 %v998_v1 }
 0x16b   : > { %939 = vmatmul.mubr.msk.bf16.vlgmr.msra.gmra.mrb[4].mxu0 %vm336_vm1, %v1077_v5 }
 0x16c   : > { %950 = vmatprep.mubr.msk.bf16.mxu0 %vm999_vm0, %v998_v1  ;;  %949 = vmatpush3.bf16.msra.mxu0 %v689_v9 }
 0x173   : > { %945 = vmatmul.mubr.msk.bf16.vlgmr.msra.gmra.mrb[4].mxu1 %vm336_vm1, %v1079_v6 }
 0x174   : > { %956 = vmatprep.mubr.msk.bf16.mxu1 %vm999_vm0, %v998_v1  ;;  %955 = vmatpush3.bf16.msra.mxu1 %v735_v11 }
 0x23e   : > { %v601_v50 = vpop.f32.mrb[4].mxu0 }
 0x23f   : > { %v657_v51 = vsel %vm654_vm3, -1e+30, %v601_v50  ;;  %v940_v52 = vpop.f32.mrb[5].mxu0 }
 0x240   : > { %v604_v53 = vpop.f32.mrb[6].mxu0  ;;  %v660_v54 = vsel %vm659_vm4, %v657_v51, -inf }
 0x241   : > { %661 = vmax.xlane.f32.xlu0 %v660_v54  ;;  %v941_v55 = vpop.f32.mrb[7].mxu0 }
 0x246   : > { %v644_v56 = vpop.f32.mrb[4].mxu1 }
 0x247   : > { %v658_v57 = vsel %vm654_vm3, -1e+30, %v644_v56  ;;  %v946_v58 = vpop.f32.mrb[5].mxu1 }
 0x248   : > { %v647_v59 = vpop.f32.mrb[6].mxu1  ;;  %v663_v60 = vsel %vm659_vm4, %v658_v57, -inf }
 0x249   : > { %664 = vmax.xlane.f32.xlu1 %v663_v60  ;;  %v947_v61 = vpop.f32.mrb[7].mxu1 }
 0x2ce   : > { %v662_v62 = vpop.xlane.xlu0 %661 }
 0x2cf   : > { %v666_v63 = vsub.f32 %v657_v51, %v662_v62 }
 0x2d1   : > { %v668_v0 = vmul.f32 1.442695, %v666_v63 }
 0x2d3   : > { %982 = vpow2.f32 %v668_v0 }
 0x2d6   : > { %v665_v1 = vpop.xlane.xlu1 %664 }
 0x2d7   : > { %v667_v2 = vsub.f32 %v658_v57, %v665_v1 }
 0x2d9   : > { %v670_v3 = vmul.f32 1.442695, %v667_v2 }
 0x2db   : > { %984 = vpow2.f32 %v670_v3 }
 0x2dd   : > { %v983_v4 = vpop.eup %982 }
 0x2de   : > { %v672_v5 = vsel %vm659_vm4, %v983_v4, 0.0 }
 0x2df   : > { %673 = vadd.xlane.f32.xlu0 %v672_v5 }
 0x2e5   : > { %v985_v6 = vpop.eup %984 }
 0x2e6   : > { %v675_v7 = vsel %vm659_vm4, %v985_v6, 0.0 }
 0x2e7   : > { %676 = vadd.xlane.f32.xlu0 %v675_v7 }
 0x36c   : > { %v674_v12 = vpop.xlane.xlu0 %673 }
 0x36d   : > { %986 = vrcp.f32 %v674_v12 }
 0x374   : > { %v677_v13 = vpop.xlane.xlu0 %676 }
 0x375   : > { %988 = vrcp.f32 %v677_v13 }
 0x377   : > { %v987_v14 = vpop.eup %986 }
 0x378   : > { %v680_v15 = vmul.f32 %v987_v14, %v983_v4 }
 0x37a   : > { %v682_v16 = vpack.c.bf16 %v680_v15, %v680_v15 }
 0x37c   : > { %951 = vmatmul.mubr.msk.bf16.vlgmr.msra.gmra.mrb[8].mxu0 %vm659_vm4, %v682_v16 }
 0x37f   : > { %v989_v17 = vpop.eup %988 }
 0x380   : > { %v681_v18 = vmul.f32 %v989_v17, %v985_v6 }
 0x382   : > { %v683_v19 = vpack.c.bf16 %v681_v18, %v681_v18 }
 0x384   : > { %957 = vmatmul.mubr.msk.bf16.vlgmr.msra.gmra.mrb[8].mxu1 %vm659_vm4, %v683_v19 }
 0x44f   : > { %v725_v20 = vpop.f32.mrb[8].mxu0 }
 0x450   : > { %v777_v21 = vpack.c.bf16 %v725_v20, %v725_v20  ;;  %v952_v22 = vpop.f32.mrb[9].mxu0 }
 0x451   : > { %v728_v23 = vpop.f32.mrb[10].mxu0 }
 0x452   : > { %780 = vst.msk [vmem:[%s318_s11] sm:$0xf] %vm779_vm6, %v777_v21  ;;  %v953_v24 = vpop.f32.mrb[11].mxu0 }
 0x457   : > { %v771_v25 = vpop.f32.mrb[8].mxu1 }
 0x458   : > { %v778_v26 = vpack.c.bf16 %v771_v25, %v771_v25  ;;  %v958_v27 = vpop.f32.mrb[9].mxu1 }
 0x459   : > { %v774_v28 = vpop.f32.mrb[10].mxu1 }
 0x45a   : > { %781 = vst.msk [vmem:[%s318_s11 + $0x4] sm:$0xf] %vm779_vm6, %v778_v26  ;;  %v959_v29 = vpop.f32.mrb[11].mxu1 }
 0x45b PF: > { %s17_s24 = sadd.s32 1, %s996_s24  }
 0x45c   : > { %p14_p4 = scmp.ge.s32.totalorder %s17_s24, 4  }
 0x45e   :  { %16 = sbr.rel (!%p14_p4) target bundleno = 1 (0x1), region = 84 }

// kernel: decoder_forward.22
= control target key start
LH: loop header
LB: loop body
LE: loop exit
PB: predicated region body
PF: predicated region fallthrough
CT: control target
= control target key end

     0   :  { %v151_v0 = vmov 0.0   ;;  %vm152_vm0 = vmmov 0   ;;  %vm64_vm1 = vcmask 523264   ;;  %vm113_vm2 = vcmask 261120   ;;  %s208_s1 = inlined_call_operand.vmem [shape: bf16[64,32], index: 1, kind: input, shape index: {}]   ;;  %s209_s0 = inlined_call_operand.vmem [shape: bf16[16,64], index: 0, kind: input, shape index: {}]   ;;  %s210_s2 = inlined_call_operand.vmem [shape: f32[1,32], index: 2, kind: input, shape index: {}]   ;;  %s211_s3 = inlined_call_operand.vmem [shape: f32[16,32], index: 3, kind: input, shape index: {}]   ;;  %s212_s4 = inlined_call_operand.vmem [shape: f32[16,32], index: 4, kind: output, shape index: {}]  }
   0x1   :  { %132 = vmatprep.subr.bf16.mxu0 %v151_v0  ;;  %v146_v1 = vld [vmem:[%s208_s1] sm:$0xff]   ;;  %140 = vmatprep.mubr.msk.bf16.mxu0 %vm152_vm0, %v151_v0  ;;  %v147_v2 = vld [vmem:[%s208_s1 + $0x8] sm:$0xff]   ;;  %v148_v3 = vld [vmem:[%s208_s1 + $0x10] sm:$0xff]  }
   0x2   :  { %133 = vmatpush3.bf16.msra.mxu0 %v146_v1  ;;  %v149_v4 = vld [vmem:[%s208_s1 + $0x18] sm:$0xff]   ;;  %v150_v5 = vld [vmem:[%s209_s0] sm:$0xff]   ;;  %v110_v12 = vld [vmem:[%s211_s3 + $0x8] sm:$0xff] }
   0x3   :  { %134 = vmatprep.subr.bf16.mxu0 %v151_v0  ;;  %v120_v6 = vld [vmem:[%s210_s2] ss:$0 sm:$0xff] }
   0x4   :  { %v109_v8 = vld [vmem:[%s211_s3] sm:$0xff] }
   0x6   :  { %135 = vmatpush3.bf16.msra.mxu0 %v147_v2 }
   0x7   :  { %136 = vmatprep.subr.bf16.mxu0 %v151_v0 }
   0xa   :  { %137 = vmatpush3.bf16.msra.mxu0 %v148_v3 }
   0xb   :  { %138 = vmatprep.subr.bf16.mxu0 %v151_v0 }
   0xe   :  { %139 = vmatpush3.bf16.msra.mxu0 %v149_v4 }
  0x11   :  { %141 = vmatmul.mubr.msk.bf16.vlgmr.msra.gmra.mrb[0].mxu0 %vm64_vm1, %v150_v5 }
  0xe4   :  { %v102_v7 = vpop.f32.mrb[0].mxu0 }
  0xe5   :  { %v103_v9 = vadd.f32 %v120_v6, %v102_v7  ;;  %v142_v10 = vpop.f32.mrb[1].mxu0 }
  0xe6   :  { %v105_v11 = vpop.f32.mrb[2].mxu0 }
  0xe7   :  { %v111_v13 = vadd.f32 %v109_v8, %v103_v9  ;;  %v106_v14 = vadd.f32 %v120_v6, %v105_v11  ;;  %v143_v15 = vpop.f32.mrb[3].mxu0 }
  0xe9   :  { %114 = vst.msk [vmem:[%s212_s4] sm:$0xff] %vm113_vm2, %v111_v13  ;;  %v112_v16 = vadd.f32 %v110_v12, %v106_v14 }
  0xeb   :  { %115 = vst.msk [vmem:[%s212_s4 + $0x8] sm:$0xff] %vm113_vm2, %v112_v16 }

// kernel: decoder_forward.26
= control target key start
LH: loop header
LB: loop body
LE: loop exit
PB: predicated region body
PF: predicated region fallthrough
CT: control target
= control target key end

     0   :  { %vm15_vm0 = vcmask 261120   ;;  %s102_s0 = inlined_call_operand.vmem [shape: f32[16,32], index: 0, kind: input, shape index: {}]   ;;  %s103_s1 = inlined_call_operand.vmem [shape: f32[1,32], index: 1, kind: input, shape index: {}]   ;;  %s104_s2 = inlined_call_operand.vmem [shape: f32[16,32], index: 2, kind: output, shape index: {}]  }
   0x1   :  { %v11_v0 = vld [vmem:[%s102_s0] sm:$0xff]  ;;  %v12_v1 = vld [vmem:[%s102_s0 + $0x8] sm:$0xff] }
   0x2   :  { %v13_v2 = vmul.f32 %v11_v0, %v11_v0  ;;  %v14_v3 = vmul.f32 %v12_v1, %v12_v1  ;;  %v59_v23 = vld [vmem:[%s103_s1] ss:$0 sm:$0xff] }
   0x4   :  { %v16_v4 = vsel %vm15_vm0, %v13_v2, 0.0  ;;  %v19_v5 = vsel %vm15_vm0, %v14_v3, 0.0 }
   0x5   :  { %17 = vadd.xlane.f32.xlu0 %v16_v4 }
   0x9   :  { %20 = vadd.xlane.f32.xlu0 %v19_v5 }
  0x92   :  { %v18_v6 = vpop.xlane.xlu0 %17 }
  0x93   :  { %60 = vrsqrt.f32 %v18_v6  ;;  %vm24_vm1 = vcmp.eq.f32.partialorder %v18_v6, inf  ;;  %v27_v10 = vand.u32 2147483648, %v18_v6  ;;  %vm26_vm2 = vcmp.eq.f32.partialorder %v18_v6, 0.0 }
  0x96   :  { %v21_v7 = vpop.xlane.xlu0 %20 }
  0x97   :  { %62 = vrsqrt.f32 %v21_v7  ;;  %vm31_vm3 = vcmp.eq.f32.partialorder %v21_v7, inf  ;;  %v34_v16 = vand.u32 2147483648, %v21_v7  ;;  %vm33_vm4 = vcmp.eq.f32.partialorder %v21_v7, 0.0 }
  0x9d   :  { %v61_v8 = vpop.eup %60 }
  0x9e   :  { %v23_v9 = vmul.f32 %v61_v8, %v18_v6 }
  0xa0   :  { %v25_v11 = vsel %vm24_vm1, %v18_v6, %v23_v9 }
  0xa1   :  { %v63_v12 = vpop.eup %62  ;;  %v28_v13 = vsel %vm26_vm2, %v27_v10, %v25_v11 }
  0xa2   :  { %v36_v14 = vmul.f32 0.17677669, %v28_v13  ;;  %v30_v15 = vmul.f32 %v63_v12, %v21_v7 }
  0xa4   :  { %v39_v17 = vadd.f32 1e-08, %v36_v14  ;;  %v32_v18 = vsel %vm31_vm3, %v21_v7, %v30_v15 }
  0xa5   :  { %v35_v19 = vsel %vm33_vm4, %v34_v16, %v32_v18 }
  0xa6   :  { %64 = vrcp.f32 %v39_v17  ;;  %v37_v20 = vmul.f32 0.17677669, %v35_v19 }
  0xa8   :  { %v40_v21 = vadd.f32 1e-08, %v37_v20 }
  0xaa   :  { %66 = vrcp.f32 %v40_v21 }
  0xb0   :  { %v65_v22 = vpop.eup %64 }
  0xb1   :  { %v42_v24 = vmul.f32 %v65_v22, %v11_v0 }
  0xb3   :  { %v51_v25 = vmul.f32 %v59_v23, %v42_v24 }
  0xb4   :  { %v67_v26 = vpop.eup %66 }
  0xb5   :  { %53 = vst.msk [vmem:[%s104_s2] sm:$0xff] %vm15_vm0, %v51_v25  ;;  %v44_v27 = vmul.f32 %v67_v26, %v12_v1 }
  0xb7   :  { %v52_v28 = vmul.f32 %v59_v23, %v44_v27 }
  0xb9   :  { %54 = vst.msk [vmem:[%s104_s2 + $0x8] sm:$0xff] %vm15_vm0, %v52_v28 }

// kernel: decoder_forward.28
= control target key start
LH: loop header
LB: loop body
LE: loop exit
PB: predicated region body
PF: predicated region fallthrough
CT: control target
= control target key end

     0   :  { %v98_v0 = vmov 0.0   ;;  %vm99_vm0 = vmmov 0   ;;  %vm30_vm1 = vcmask 261120   ;;  %vm74_vm2 = vcmask 388096   ;;  %s127_s1 = inlined_call_operand.vmem [shape: bf16[32,48], index: 1, kind: input, shape index: {}]   ;;  %s128_s0 = inlined_call_operand.vmem [shape: f32[4,32], index: 0, kind: input, shape index: {}]   ;;  %s129_s2 = inlined_call_operand.vmem [shape: f32[4,48], index: 2, kind: output, shape index: {}]  }
   0x1   :  { %86 = vmatprep.subr.bf16.mxu0 %v98_v0  ;;  %v96_v1 = vld [vmem:[%s127_s1] sm:$0xff]   ;;  %90 = vmatprep.mubr.msk.bf16.mxu0 %vm99_vm0, %v98_v0  ;;  %v97_v2 = vld [vmem:[%s127_s1 + $0x8] sm:$0xff]  }
   0x2   :  { %87 = vmatpush3.bf16.msra.mxu0 %v96_v1  ;;  %v12_v3 = vld [vmem:[%s128_s0] sm:$0xf] }
   0x3   :  { %88 = vmatprep.subr.bf16.mxu0 %v98_v0  ;;  %v13_v4 = vpack.c.bf16 %v12_v3, %v12_v3 }
   0x6   :  { %89 = vmatpush3.bf16.msra.mxu0 %v97_v2 }
   0x9   :  { %91 = vmatmul.mubr.msk.bf16.vlgmr.msra.gmra.mrb[0].mxu0 %vm30_vm1, %v13_v4 }
  0xdc   :  { %v68_v5 = vpop.f32.mrb[0].mxu0 }
  0xdd   :  { %75 = vst.msk [vmem:[%s129_s2] sm:$0xf] %vm74_vm2, %v68_v5  ;;  %v92_v6 = vpop.f32.mrb[1].mxu0 }
  0xde   :  { %v71_v7 = vpop.f32.mrb[2].mxu0 }
  0xdf   :  { %v93_v8 = vpop.f32.mrb[3].mxu0 }

// kernel: decoder_forward.27
= control target key start
LH: loop header
LB: loop body
LE: loop exit
PB: predicated region body
PF: predicated region fallthrough
CT: control target
= control target key end

     0   :  { %v145_v0 = vmov 0.0   ;;  %vm146_vm0 = vmmov 0   ;;  %vm39_vm1 = vcmask 130048   ;;  %vm106_vm2 = vcmask 392192   ;;  %s215_s1 = inlined_call_operand.vmem [shape: bf16[16,48], index: 1, kind: input, shape index: {}]   ;;  %s216_s0 = inlined_call_operand.vmem [shape: f32[48,16], index: 0, kind: input, shape index: {}]   ;;  %s217_s2 = inlined_call_operand.vmem [shape: f32[1,48], index: 2, kind: input, shape index: {}]   ;;  %s218_s3 = inlined_call_operand.vmem [shape: f32[48,48], index: 3, kind: output, shape index: {}]  }
   0x1   :  { %140 = vmatprep.subr.bf16.mxu1 %v145_v0  ;;  %v144_v1 = vld [vmem:[%s215_s1] sm:$0xff]   ;;  %132 = vmatprep.mubr.msk.bf16.mxu1 %vm146_vm0, %v145_v0  ;;  %v17_v2 = vld [vmem:[%s216_s0 + $0x10] sm:$0xff]  ;;  %v18_v3 = vld [vmem:[%s216_s0 + $0x18] sm:$0xff] }
   0x2   :  { %126 = vmatprep.subr.bf16.mxu0 %v145_v0  ;;  %128 = vmatprep.mubr.msk.bf16.mxu0 %vm146_vm0, %v145_v0  ;;  %v15_v4 = vld [vmem:[%s216_s0] sm:$0xff]  ;;  %v22_v5 = vpack.c.bf16 %v18_v3, %v17_v2  ;;  %v16_v6 = vld [vmem:[%s216_s0 + $0x8] sm:$0xff] }
   0x3   :  { %141 = vmatpush3.bf16.msra.mxu1 %v144_v1  ;;  %127 = vmatpush3.bf16.msra.mxu0 %v144_v1  ;;  %v21_v7 = vpack.c.bf16 %v16_v6, %v15_v4  ;;  %v19_v8 = vld [vmem:[%s216_s0 + $0x20] sm:$0xff]  ;;  %v20_v9 = vld [vmem:[%s216_s0 + $0x28] sm:$0xff] }
   0x4   :  { %v23_v10 = vpack.c.bf16 %v20_v9, %v19_v8  ;;  %v117_v11 = vld [vmem:[%s217_s2] ss:$0 sm:$0xff] }
   0x6   :  { %133 = vmatmul.mubr.msk.bf16.vlgmr.msra.gmra.mrb[0].mxu1 %vm39_vm1, %v22_v5  ;;  %129 = vmatmul.mubr.msk.bf16.vlgmr.msra.gmra.mrb[0].mxu0 %vm39_vm1, %v21_v7 }
   0x7   :  { %136 = vmatprep.mubr.msk.bf16.mxu1 %vm146_vm0, %v145_v0 }
   0xe   :  { %137 = vmatmul.mubr.msk.bf16.gmra.mrb[4].mxu1 %vm39_vm1, %v23_v10 }
  0xd9   :  { %v91_v12 = vpop.f32.mrb[0].mxu1  ;;  %v83_v13 = vpop.f32.mrb[0].mxu0 }
  0xda   :  { %v92_v14 = vadd.f32 %v117_v11, %v91_v12  ;;  %v134_v15 = vpop.f32.mrb[1].mxu1  ;;  %v84_v16 = vadd.f32 %v117_v11, %v83_v13  ;;  %v130_v17 = vpop.f32.mrb[1].mxu0 }
  0xdb   :  { %v94_v18 = vpop.f32.mrb[2].mxu1  ;;  %v86_v19 = vpop.f32.mrb[2].mxu0 }
  0xdc   :  { %109 = vst.msk [vmem:[%s218_s3 + $0x10] sm:$0xff] %vm106_vm2, %v92_v14  ;;  %v95_v20 = vadd.f32 %v117_v11, %v94_v18  ;;  %v135_v21 = vpop.f32.mrb[3].mxu1  ;;  %107 = vst.msk [vmem:[%s218_s3] sm:$0xff] %vm106_vm2, %v84_v16  ;;  %v87_v22 = vadd.f32 %v117_v11, %v86_v19  ;;  %v131_v23 = vpop.f32.mrb[3].mxu0 }
  0xde   :  { %110 = vst.msk [vmem:[%s218_s3 + $0x18] sm:$0xff] %vm106_vm2, %v95_v20  ;;  %108 = vst.msk [vmem:[%s218_s3 + $0x8] sm:$0xff] %vm106_vm2, %v87_v22 }
  0xe1   :  { %v99_v24 = vpop.f32.mrb[4].mxu1 }
  0xe2   :  { %v100_v25 = vadd.f32 %v117_v11, %v99_v24  ;;  %v138_v26 = vpop.f32.mrb[5].mxu1 }
  0xe3   :  { %v102_v27 = vpop.f32.mrb[6].mxu1 }
  0xe4   :  { %111 = vst.msk [vmem:[%s218_s3 + $0x20] sm:$0xff] %vm106_vm2, %v100_v25  ;;  %v103_v28 = vadd.f32 %v117_v11, %v102_v27  ;;  %v139_v29 = vpop.f32.mrb[7].mxu1 }
  0xe6   :  { %112 = vst.msk [vmem:[%s218_s3 + $0x28] sm:$0xff] %vm106_vm2, %v103_v28 }

// kernel: decoder_forward.30
= control target key start
LH: loop header
LB: loop body
LE: loop exit
PB: predicated region body
PF: predicated region fallthrough
CT: control target
= control target key end

     0   :  { %v200_v0 = vmov 0.0   ;;  %vm201_vm0 = vmmov 0   ;;  %vm45_vm1 = vcmask 392192   ;;  %vm136_vm2 = vcmask 519168   ;;  %s271_s1 = inlined_call_operand.vmem [shape: bf16[48,64], index: 1, kind: input, shape index: {}]   ;;  %s272_s0 = inlined_call_operand.vmem [shape: f32[48,48], index: 0, kind: input, shape index: {}]   ;;  %s273_s2 = inlined_call_operand.vmem [shape: bf16[48,64], index: 2, kind: output, shape index: {}]  }
   0x1   :  { %189 = vmatprep.subr.bf16.mxu1 %v200_v0  ;;  %v197_v1 = vld [vmem:[%s271_s1] sm:$0xff]   ;;  %171 = vmatprep.subr.bf16.mxu0 %v200_v0  ;;  %v198_v2 = vld [vmem:[%s271_s1 + $0x8] sm:$0xff]   ;;  %v199_v3 = vld [vmem:[%s271_s1 + $0x10] sm:$0xff]  }
   0x2   :  { %181 = vmatprep.mubr.msk.bf16.mxu1 %vm201_vm0, %v200_v0  ;;  %177 = vmatprep.mubr.msk.bf16.mxu0 %vm201_vm0, %v200_v0  ;;  %v14_v4 = vld [vmem:[%s272_s0 + $0x10] sm:$0xff]  ;;  %v15_v5 = vld [vmem:[%s272_s0 + $0x18] sm:$0xff]  ;;  %v12_v6 = vld [vmem:[%s272_s0] sm:$0xff] }
   0x3   :  { %192 = vmatpush3.bf16.msra.mxu1 %v197_v1  ;;  %172 = vmatpush3.bf16.msra.mxu0 %v197_v1  ;;  %v13_v7 = vld [vmem:[%s272_s0 + $0x8] sm:$0xff]  ;;  %v19_v8 = vpack.c.bf16 %v15_v5, %v14_v4  ;;  %v16_v10 = vld [vmem:[%s272_s0 + $0x20] sm:$0xff] }
   0x4   :  { %190 = vmatprep.subr.bf16.mxu1 %v200_v0  ;;  %173 = vmatprep.subr.bf16.mxu0 %v200_v0  ;;  %v18_v9 = vpack.c.bf16 %v13_v7, %v12_v6  ;;  %v17_v11 = vld [vmem:[%s272_s0 + $0x28] sm:$0xff] }
   0x5   :  { %v20_v12 = vpack.c.bf16 %v17_v11, %v16_v10 }
   0x7   :  { %193 = vmatpush3.bf16.msra.mxu1 %v198_v2  ;;  %174 = vmatpush3.bf16.msra.mxu0 %v198_v2 }
   0x8   :  { %191 = vmatprep.subr.bf16.mxu1 %v200_v0  ;;  %175 = vmatprep.subr.bf16.mxu0 %v200_v0 }
   0xb   :  { %194 = vmatpush3.bf16.msra.mxu1 %v199_v3  ;;  %176 = vmatpush3.bf16.msra.mxu0 %v199_v3 }
   0xe   :  { %182 = vmatmul.mubr.msk.bf16.vlgmr.msra.gmra.mrb[0].mxu1 %vm45_vm1, %v19_v8  ;;  %178 = vmatmul.mubr.msk.bf16.vlgmr.msra.gmra.mrb[0].mxu0 %vm45_vm1, %v18_v9 }
   0xf   :  { %185 = vmatprep.mubr.msk.bf16.mxu1 %vm201_vm0, %v200_v0 }
  0x16   :  { %186 = vmatmul.mubr.msk.bf16.gmra.mrb[4].mxu1 %vm45_vm1, %v20_v12 }
  0xe1   :  { %v97_v13 = vpop.f32.mrb[0].mxu1  ;;  %v89_v14 = vpop.f32.mrb[0].mxu0 }
  0xe2   :  { %v161_v15 = vpack.c.bf16 %v97_v13, %v97_v13  ;;  %v183_v16 = vpop.f32.mrb[1].mxu1  ;;  %v159_v17 = vpack.c.bf16 %v89_v14, %v89_v14  ;;  %v179_v18 = vpop.f32.mrb[1].mxu0 }
  0xe3   :  { %v100_v19 = vpop.f32.mrb[2].mxu1  ;;  %v92_v20 = vpop.f32.mrb[2].mxu0 }
  0xe4   :  { %139 = vst.msk [vmem:[%s273_s2 + $0x8] sm:$0xf] %vm136_vm2, %v161_v15  ;;  %v162_v21 = vpack.c.bf16 %v100_v19, %v100_v19  ;;  %v184_v22 = vpop.f32.mrb[3].mxu1  ;;  %137 = vst.msk [vmem:[%s273_s2] sm:$0xf] %vm136_vm2, %v159_v17  ;;  %v160_v23 = vpack.c.bf16 %v92_v20, %v92_v20  ;;  %v180_v24 = vpop.f32.mrb[3].mxu0 }
  0xe6   :  { %140 = vst.msk [vmem:[%s273_s2 + $0xc] sm:$0xf] %vm136_vm2, %v162_v21  ;;  %138 = vst.msk [vmem:[%s273_s2 + $0x4] sm:$0xf] %vm136_vm2, %v160_v23 }
  0xe9   :  { %v105_v25 = vpop.f32.mrb[4].mxu1 }
  0xea   :  { %v163_v26 = vpack.c.bf16 %v105_v25, %v105_v25  ;;  %v187_v27 = vpop.f32.mrb[5].mxu1 }
  0xeb   :  { %v108_v28 = vpop.f32.mrb[6].mxu1 }
  0xec   :  { %141 = vst.msk [vmem:[%s273_s2 + $0x10] sm:$0xf] %vm136_vm2, %v163_v26  ;;  %v164_v29 = vpack.c.bf16 %v108_v28, %v108_v28  ;;  %v188_v30 = vpop.f32.mrb[7].mxu1 }
  0xee   :  { %142 = vst.msk [vmem:[%s273_s2 + $0x14] sm:$0xf] %vm136_vm2, %v164_v29 }

// kernel: tile.9
= control target key start
LH: loop header
LB: loop body
LE: loop exit
PB: predicated region body
PF: predicated region fallthrough
CT: control target
= control target key end

     0   :  { %vm3_vm0 = vcmask 392192   ;;  %s34_s0 = inlined_call_operand.vmem [shape: f32[48,2,6], index: 0, kind: input, shape index: {}]   ;;  %s35_s1 = inlined_call_operand.vmem [shape: f32[48,12], index: 1, kind: output, shape index: {}]  }
   0x1   :  { %v2_v0 = vld [vmem:[%s34_s0] sm:$0x3f]   ;;  %v10_v1 = vld [vmem:[%s34_s0 + $0x8] sm:$0x3f]  }
   0x2   :  { %4 = vst.msk [vmem:[%s35_s1] sm:$0x3f] %vm3_vm0, %v2_v0   ;;  %11 = vst.msk [vmem:[%s35_s1 + $0x6] sm:$0x3f] %vm3_vm0, %v10_v1  }

// kernel: decoder_forward.29
= control target key start
LH: loop header
LB: loop body
LE: loop exit
PB: predicated region body
PF: predicated region fallthrough
CT: control target
= control target key end

     0   :  { %v113_v0 = vmov 0.0   ;;  %vm114_vm0 = vmmov 0   ;;  %vm31_vm1 = vcmask 261120   ;;  %vm84_vm2 = vcmask 257024   ;;  %s148_s1 = inlined_call_operand.vmem [shape: bf16[32,32], index: 1, kind: input, shape index: {}]   ;;  %s149_s0 = inlined_call_operand.vmem [shape: f32[16,32], index: 0, kind: input, shape index: {}]   ;;  %s150_s2 = inlined_call_operand.vmem [shape: bf16[16,32], index: 2, kind: output, shape index: {}]  }
   0x1   :  { %101 = vmatprep.subr.bf16.mxu0 %v113_v0  ;;  %v111_v1 = vld [vmem:[%s148_s1] sm:$0xff]   ;;  %105 = vmatprep.mubr.msk.bf16.mxu0 %vm114_vm0, %v113_v0  ;;  %v112_v2 = vld [vmem:[%s148_s1 + $0x8] sm:$0xff]  }
   0x2   :  { %102 = vmatpush3.bf16.msra.mxu0 %v111_v1  ;;  %v12_v3 = vld [vmem:[%s149_s0] sm:$0xff]  ;;  %v13_v4 = vld [vmem:[%s149_s0 + $0x8] sm:$0xff] }
   0x3   :  { %103 = vmatprep.subr.bf16.mxu0 %v113_v0  ;;  %v14_v5 = vpack.c.bf16 %v13_v4, %v12_v3 }
   0x6   :  { %104 = vmatpush3.bf16.msra.mxu0 %v112_v2 }
   0x9   :  { %106 = vmatmul.mubr.msk.bf16.vlgmr.msra.gmra.mrb[0].mxu0 %vm31_vm1, %v14_v5 }
  0xdc   :  { %v69_v6 = vpop.f32.mrb[0].mxu0 }
  0xdd   :  { %v96_v7 = vpack.c.bf16 %v69_v6, %v69_v6  ;;  %v107_v8 = vpop.f32.mrb[1].mxu0 }
  0xde   :  { %v72_v9 = vpop.f32.mrb[2].mxu0 }
  0xdf   :  { %85 = vst.msk [vmem:[%s150_s2] sm:$0xf] %vm84_vm2, %v96_v7  ;;  %v97_v10 = vpack.c.bf16 %v72_v9, %v72_v9  ;;  %v108_v11 = vpop.f32.mrb[3].mxu0 }
  0xe1   :  { %86 = vst.msk [vmem:[%s150_s2 + $0x4] sm:$0xf] %vm84_vm2, %v97_v10 }

// kernel: decoder_forward.32
= control target key start
LH: loop header
LB: loop body
LE: loop exit
PB: predicated region body
PF: predicated region fallthrough
CT: control target
= control target key end

     0   :  { %v106_v0 = vmov 0.0   ;;  %vm107_vm0 = vmmov 0   ;;  %vm35_vm1 = vcmask 261120   ;;  %s138_s1 = inlined_call_operand.vmem [shape: bf16[32,32], index: 1, kind: input, shape index: {}]   ;;  %s139_s0 = inlined_call_operand.vmem [shape: bf16[16,32], index: 0, kind: input, shape index: {}]   ;;  %s140_s2 = inlined_call_operand.vmem [shape: f32[16,32], index: 2, kind: output, shape index: {}]  }
   0x1   :  { %93 = vmatprep.subr.bf16.mxu0 %v106_v0  ;;  %v103_v1 = vld [vmem:[%s138_s1] sm:$0xff]   ;;  %97 = vmatprep.mubr.msk.bf16.mxu0 %vm107_vm0, %v106_v0  ;;  %v104_v2 = vld [vmem:[%s138_s1 + $0x8] sm:$0xff]  }
   0x2   :  { %94 = vmatpush3.bf16.msra.mxu0 %v103_v1  ;;  %v105_v3 = vld [vmem:[%s139_s0] sm:$0xff]  }
   0x3   :  { %95 = vmatprep.subr.bf16.mxu0 %v106_v0 }
   0x6   :  { %96 = vmatpush3.bf16.msra.mxu0 %v104_v2 }
   0x9   :  { %98 = vmatmul.mubr.msk.bf16.vlgmr.msra.gmra.mrb[0].mxu0 %vm35_vm1, %v105_v3 }
  0xdc   :  { %v73_v4 = vpop.f32.mrb[0].mxu0 }
  0xdd   :  { %80 = vst.msk [vmem:[%s140_s2] sm:$0xff] %vm35_vm1, %v73_v4  ;;  %v99_v5 = vpop.f32.mrb[1].mxu0 }
  0xde   :  { %v76_v6 = vpop.f32.mrb[2].mxu0 }
  0xdf   :  { %81 = vst.msk [vmem:[%s140_s2 + $0x8] sm:$0xff] %vm35_vm1, %v76_v6  ;;  %v100_v7 = vpop.f32.mrb[3].mxu0 }

// kernel: decoder_forward.31
= control target key start
LH: loop header
LB: loop body
LE: loop exit
PB: predicated region body
PF: predicated region fallthrough
CT: control target
= control target key end

     0   :  { %s1262_s24 = smov 0   ;;  %s1264_s25 = smov 0   ;;  %s1443_s0 = inlined_call_operand.vmem [shape: bf16[2,2,2,4,16], index: 0, kind: input, shape index: {}]   ;;  %s1444_s1 = inlined_call_operand.vmem [shape: bf16[2,2,2,12,16], index: 1, kind: input, shape index: {}]   ;;  %s1445_s2 = inlined_call_operand.vmem [shape: bf16[2,2,2,12,16], index: 2, kind: input, shape index: {}]   ;;  %s1446_s3 = inlined_call_operand.vmem [shape: bf16[2,16,48], index: 3, kind: input, shape index: {}]   ;;  %s1447_s4 = inlined_call_operand.vmem [shape: f32[4,24], index: 4, kind: input, shape index: {}]   ;;  %s1448_s5 = inlined_call_operand.vmem [shape: f32[4,24], index: 5, kind: input, shape index: {}]   ;;  %s1449_s6 = inlined_call_operand.vmem [shape: f32[48,12], index: 6, kind: input, shape index: {}]   ;;  %s1450_s7 = inlined_call_operand.vmem [shape: bf16[2,2,2,4,16], index: 7, kind: output, shape index: {}]  }
   0x1   :  { %s1266_s26 = smov 0   ;;  %s1268_s27 = smov 0  }
   0x2   :  { %s1270_s28 = smov 0  }
   0x3 LB: > { %s26_s29 = sadd.s32 1, %s1208_s26  ;;  %s29_s30 = sadd.s32 1, %s1212_s27  ;;  %s1216_s28 = sphi %s1270_s28, %s17_s28   ;;  %s1212_s27 = sphi %s1268_s27, %s1454_s27   ;;  %s1208_s26 = sphi %s1266_s26, %s1453_s26   ;;  %s1204_s25 = sphi %s1264_s25, %s1452_s25   ;;  %s1200_s24 = sphi %s1262_s24, %s1451_s24  }
   0x4   : > { %p27_p0 = scmp.ge.s32.totalorder %s26_s29, 2  ;;  %p1007_p1 = scmp.ge.s32.totalorder %s1216_s28, 1 }
   0x5   : > { %p289_p2 = scmp.lt.s32.totalorder %s1216_s28, 5 }
   0x6   : > { %s1456_s29 = smov (%p27_p0, %s26_s29), 0  ;;  %s1458_s30 = smov (!%p27_p0, %s29_s30), %s1212_s27 }
   0x7   : > { %p290_p3 = pnand %p1007_p1, %p289_p2  ;;  %p31_p4 = scmp.ge.s32.totalorder %s1458_s30, 2 }
   0x8   : > { %v1164_v0 = vld [vmem:[%s1446_s3] sm:$0xff] (!%p290_p3)   ;;  %v1218_v1 = vmov (!%p290_p3), 0.0   ;;  %v1165_v2 = vld [vmem:[%s1446_s3 + $0x8] sm:$0xff] (!%p290_p3)   ;;  %vm1219_vm0 = vmmov (!%p290_p3), 0   ;;  %p347_p5 = scmp.lt.s32.totalorder (!%p290_p3), %s1204_s25, 1  ;;  %p349_p6 = scmp.lt.s32.totalorder (!%p290_p3), %s1200_s24, 1 }
   0x9   : > { %s1460_s30 = smov (%p31_p4, %s1458_s30), 0  ;;  %293 = sbr.rel (%p290_p3) target bundleno = 1119 (0x45f), region = 48 }
   0xa   : > { %1056 = vmatprep.subr.bf16.mxu0 (!%p290_p3), %v1218_v1  ;;  %1062 = vmatprep.subr.bf16.mxu1 (!%p290_p3), %v1218_v1  ;;  %v1308_v3 = vld [vmem:[%s1448_s5] sm:$0xf] (!%p290_p3)  ;;  %s1220_s14 = smov (!%p290_p3), 24   ;;  %vm404_vm1 = vcmask (!%p290_p3), 130048   ;;  %v539_v8 = vld [vmem:[%s1449_s6 + $0x8] sm:$0xff] (!%p290_p3)  ;;  %v540_v9 = vld [vmem:[%s1449_s6 + $0x10] sm:$0xff] (!%p290_p3) }
   0xb   : > { %1057 = vmatpush3.bf16.msra.mxu0 (!%p290_p3), %v1164_v0  ;;  %1058 = vmatprep.mubr.msk.bf16.mxu0 (!%p290_p3), %vm1219_vm0, %v1218_v1  ;;  %v1323_v4 = vld [vmem:[%s1447_s4] sm:$0xf] (!%p290_p3)  ;;  %v541_v11 = vld [vmem:[%s1449_s6 + $0x18] sm:$0xff] (!%p290_p3)  ;;  %v543_v14 = vld [vmem:[%s1449_s6 + $0x28] sm:$0xff] (!%p290_p3)  ;;  %vm535_vm2 = vcmask (!%p290_p3), 195584   ;;  %vm549_vm3 = vcmask (!%p290_p3), 392192  }
   0xc   : > { %1063 = vmatpush3.bf16.msra.mxu1 (!%p290_p3), %v1165_v2  ;;  %1064 = vmatprep.mubr.msk.bf16.mxu1 (!%p290_p3), %vm1219_vm0, %v1218_v1  ;;  %v538_v7 = vld [vmem:[%s1449_s6] sm:$0xff] (!%p290_p3)  ;;  %v545_v12 = vpack.c.bf16 (!%p290_p3), %v541_v11, %v540_v9  ;;  %vm732_vm4 = vcmask (!%p290_p3), 93184   ;;  %vm766_vm5 = vcmask (!%p290_p3), 1045504   ;;  %vm762_vm6 = vcmask (!%p290_p3), 97280  }
   0xd   : > { %502 = vrot.lane.b32.xlu0 (!%p290_p3), %v1308_v3, %s1220_s14  ;;  %1068 = vmatprep.subr.bf16.mxu0 (!%p290_p3), %v1218_v1  ;;  %v544_v10 = vpack.c.bf16 (!%p290_p3), %v539_v8, %v538_v7  ;;  %v542_v13 = vld [vmem:[%s1449_s6 + $0x20] sm:$0xff] (!%p290_p3)  ;;  %vm863_vm7 = vcmask (!%p290_p3), 123904  }
   0xe   : > { %1078 = vmatprep.subr.bf16.mxu1 (!%p290_p3), %v1218_v1  ;;  %v546_v15 = vpack.c.bf16 (!%p290_p3), %v543_v14, %v542_v13 }
  0x10   : > { %s1462_s25 = smov (!%p347_p5, %s1204_s25), 1  ;;  %s1464_s24 = smov (!%p349_p6, %s1200_s24), 1 }
  0x11   : > { %s1009_s17 = sshll.u32 %s1462_s25, 2  ;;  %s1008_s18 = sshll.u32 %s1464_s24, 1  ;;  %518 = vrot.lane.b32.xlu0 %v1323_v4, %s1220_s14 }
  0x12   : > { %s1328_s19 = sadd.s32 %s1009_s17, %s1008_s18  ;;  %s1012_s8 = sshll.u32 %s1462_s25, 3 }
  0x13   : > { %s1010_s20 = sshll.u32 %s1328_s19, 1 }
  0x14   : > { %s355_s23 = scalar_lea.vmem %s1443_s0, %s1010_s20  ;;  %s382_s18 = scalar_lea.vmem %s1450_s7, %s1010_s20 }
  0x15   : > { %v1338_v5 = vld [vmem:[%s355_s23] sm:$0x3]  ;;  %v1340_v6 = vld [vmem:[%s355_s23 + $0x2] sm:$0x3]  ;;  %s1011_s23 = sshll.u32 %s1464_s24, 2  ;;  %s1221_s24 = smov 104  }
  0x16   : > { %1059 = vmatmul.mubr.msk.bf16.vlgmr.msra.gmra.mrb[0].mxu0 %vm404_vm1, %v1338_v5  ;;  %1065 = vmatmul.mubr.msk.bf16.vlgmr.msra.gmra.mrb[0].mxu1 %vm404_vm1, %v1340_v6  ;;  %s1376_s9 = sadd.s32 %s1012_s8, %s1011_s23 }
  0x17   : > { %1074 = vmatprep.mubr.msk.bf16.mxu0 %vm1219_vm0, %v1218_v1  ;;  %1084 = vmatprep.mubr.msk.bf16.mxu1 %vm1219_vm0, %v1218_v1  ;;  %s1013_s10 = sshll.u32 %s1376_s9, 2 }
  0x18   : > { %1069 = vmatpush3.bf16.msra.mxu0 %v544_v10  ;;  %1079 = vmatpush3.bf16.msra.mxu1 %v544_v10  ;;  %s1384_s13 = scalar_lea.vmem %s1444_s1, %s1013_s10  ;;  %s373_s15 = scalar_lea.vmem %s1445_s2, %s1013_s10 }
  0x19   : > { %1070 = vmatprep.subr.bf16.mxu0 %v1218_v1  ;;  %1080 = vmatprep.subr.bf16.mxu1 %v1218_v1  ;;  %v1166_v34 = vld [vmem:[%s1384_s13] sm:$0x3f]   ;;  %v1167_v44 = vld [vmem:[%s1384_s13 + $0x8] sm:$0x3f]  }
  0x1a   : > { %v642_v40 = vsel %vm404_vm1, %v1166_v34, 0  ;;  %v690_v49 = vsel %vm404_vm1, %v1167_v44, 0  ;;  %v1169_v8 = vld [vmem:[%s373_s15 + $0x8] sm:$0x3f]  }
  0x1b   : > { %v819_v9 = vsel %vm766_vm5, %v1169_v8, 0 }
  0x1c   : > { %1071 = vmatpush3.bf16.msra.mxu0 %v545_v12  ;;  %1081 = vmatpush3.bf16.msra.mxu1 %v545_v12 }
  0x1d   : > { %1072 = vmatprep.subr.bf16.mxu0 %v1218_v1  ;;  %1082 = vmatprep.subr.bf16.mxu1 %v1218_v1 }
  0x20   : > { %1073 = vmatpush3.bf16.msra.mxu0 %v546_v15  ;;  %1083 = vmatpush3.bf16.msra.mxu1 %v546_v15 }
  0x21   : > { %1088 = vmatprep.subr.bf16.mxu0 %v1218_v1  ;;  %1094 = vmatprep.subr.bf16.mxu1 %v1218_v1 }
  0x7f   : > { %v503_v16 = vpop.permute.xlu0 %502 }
  0x83   : > { %v519_v29 = vpop.permute.xlu0 %518 }
  0xe9   : > { %v442_v17 = vpop.f32.mrb[0].mxu0  ;;  %v491_v18 = vpop.f32.mrb[0].mxu1 }
  0xea   : > { %v1060_v19 = vpop.f32.mrb[1].mxu0  ;;  %v1066_v20 = vpop.f32.mrb[1].mxu1  ;;  %v523_v21 = vmul.f32 %v1308_v3, %v442_v17  ;;  %v505_v22 = vmul.f32 %v503_v16, %v442_v17  ;;  %v506_v27 = vmul.f32 %v503_v16, %v491_v18  ;;  %v524_v28 = vmul.f32 %v1308_v3, %v491_v18 }
  0xeb   : > { %v445_v23 = vpop.f32.mrb[2].mxu0  ;;  %v494_v24 = vpop.f32.mrb[2].mxu1  ;;  %v521_v30 = vmul.f32 %v519_v29, %v442_v17  ;;  %v499_v31 = vmul.f32 %v1323_v4, %v442_v17  ;;  %v500_v41 = vmul.f32 %v1323_v4, %v491_v18  ;;  %v522_v42 = vmul.f32 %v519_v29, %v491_v18 }
  0xec   : > { %527 = vrot.lane.b32.xlu0 %v523_v21, %s1220_s14  ;;  %509 = vrot.lane.b32.xlu1 %v505_v22, %s1221_s24  ;;  %v1061_v25 = vpop.f32.mrb[3].mxu0  ;;  %v1067_v26 = vpop.f32.mrb[3].mxu1 }
  0xf0   : > { %511 = vrot.lane.b32.xlu1 %v506_v27, %s1221_s24 }
  0xf4   : > { %529 = vrot.lane.b32.xlu1 %v524_v28, %s1220_s14 }
 0x15e   : > { %v528_v32 = vpop.permute.xlu0 %527  ;;  %v510_v33 = vpop.permute.xlu1 %509 }
 0x15f   : > { %v533_v35 = vsub.f32 %v521_v30, %v528_v32  ;;  %v515_v36 = vadd.f32 %v510_v33, %v499_v31 }
 0x161   : > { %v536_v37 = vsel %vm535_vm2, %v515_v36, %v533_v35 }
 0x162   : > { %v547_v38 = vpack.c.bf16 %v536_v37, %v536_v37  ;;  %v512_v39 = vpop.permute.xlu1 %511 }
 0x163   : > { %v516_v45 = vadd.f32 %v512_v39, %v500_v41 }
 0x164   : > { %1075 = vmatmul.mubr.msk.bf16.vlgmr.msra.gmra.mrb[4].mxu0 %vm549_vm3, %v547_v38 }
 0x165   : > { %1089 = vmatpush3.bf16.xpose.msra.mxu0 %v642_v40  ;;  %1090 = vmatprep.mubr.msk.bf16.mxu0 %vm1219_vm0, %v1218_v1 }
 0x166   : > { %v530_v43 = vpop.permute.xlu1 %529  ;;  %1100 = vmatprep.subr.bf16.mxu0 %v1218_v1 }
 0x167   : > { %v534_v46 = vsub.f32 %v522_v42, %v530_v43 }
 0x169   : > { %v537_v47 = vsel %vm535_vm2, %v516_v45, %v534_v46 }
 0x16a   : > { %v548_v48 = vpack.c.bf16 %v537_v47, %v537_v47 }
 0x16c   : > { %1085 = vmatmul.mubr.msk.bf16.vlgmr.msra.gmra.mrb[4].mxu1 %vm549_vm3, %v548_v48 }
 0x16d   : > { %1095 = vmatpush3.bf16.xpose.msra.mxu1 %v690_v49  ;;  %1096 = vmatprep.mubr.msk.bf16.mxu1 %vm1219_vm0, %v1218_v1 }
 0x16e   : > { %1106 = vmatprep.subr.bf16.mxu1 %v1218_v1 }
 0x170   : > { %1091 = vmatmul.mubr.msk.bf16.vlgmr.msra.gmra.mrb[4].mxu0 %vm404_vm1, %v1338_v5 }
 0x171   : > { %1102 = vmatprep.mubr.msk.bf16.mxu0 %vm1219_vm0, %v1218_v1 }
 0x178   : > { %1097 = vmatmul.mubr.msk.bf16.vlgmr.msra.gmra.mrb[4].mxu1 %vm404_vm1, %v1340_v6  ;;  %v1168_v6 = vld [vmem:[%s373_s15] sm:$0x3f]  }
 0x179   : > { %1108 = vmatprep.mubr.msk.bf16.mxu1 %vm1219_vm0, %v1218_v1  ;;  %v768_v7 = vsel %vm766_vm5, %v1168_v6, 0  ;;  %1107 = vmatpush3.bf16.msra.mxu1 %v819_v9 }
 0x17a   : > { %1101 = vmatpush3.bf16.msra.mxu0 %v768_v7 }
 0x243   : > { %v678_v50 = vpop.f32.mrb[4].mxu0 }
 0x244   : > { %v1092_v51 = vpop.f32.mrb[5].mxu0  ;;  %v733_v52 = vsel %vm732_vm4, %v678_v50, -inf }
 0x245   : > { %734 = vmax.xlane.f32.xlu0 %v733_v52  ;;  %v681_v53 = vpop.f32.mrb[6].mxu0 }
 0x246   : > { %v1093_v54 = vpop.f32.mrb[7].mxu0 }
 0x24b   : > { %v726_v55 = vpop.f32.mrb[4].mxu1 }
 0x24c   : > { %v1098_v56 = vpop.f32.mrb[5].mxu1  ;;  %v736_v57 = vsel %vm732_vm4, %v726_v55, -inf }
 0x24d   : > { %737 = vmax.xlane.f32.xlu1 %v736_v57  ;;  %v729_v58 = vpop.f32.mrb[6].mxu1 }
 0x24e   : > { %v1099_v59 = vpop.f32.mrb[7].mxu1 }
 0x2d2   : > { %v735_v60 = vpop.xlane.xlu0 %734 }
 0x2d3   : > { %v739_v61 = vsub.f32 %v678_v50, %v735_v60 }
 0x2d5   : > { %v741_v62 = vmul.f32 1.442695, %v739_v61 }
 0x2d7   : > { %1170 = vpow2.f32 %v741_v62 }
 0x2da   : > { %v738_v63 = vpop.xlane.xlu1 %737 }
 0x2db   : > { %v740_v0 = vsub.f32 %v726_v55, %v738_v63 }
 0x2dd   : > { %v743_v1 = vmul.f32 1.442695, %v740_v0 }
 0x2df   : > { %1172 = vpow2.f32 %v743_v1 }
 0x2e1   : > { %v1171_v2 = vpop.eup %1170 }
 0x2e2   : > { %v745_v3 = vsel %vm732_vm4, %v1171_v2, 0.0 }
 0x2e3   : > { %746 = vadd.xlane.f32.xlu0 %v745_v3 }
 0x2e9   : > { %v1173_v4 = vpop.eup %1172 }
 0x2ea   : > { %v748_v5 = vsel %vm732_vm4, %v1173_v4, 0.0 }
 0x2eb   : > { %749 = vadd.xlane.f32.xlu0 %v748_v5 }
 0x370   : > { %v747_v10 = vpop.xlane.xlu0 %746 }
 0x371   : > { %1174 = vrcp.f32 %v747_v10 }
 0x378   : > { %v750_v11 = vpop.xlane.xlu0 %749 }
 0x379   : > { %1176 = vrcp.f32 %v750_v11 }
 0x37b   : > { %v1175_v12 = vpop.eup %1174 }
 0x37c   : > { %v753_v13 = vmul.f32 %v1175_v12, %v1171_v2 }
 0x37e   : > { %v755_v14 = vpack.c.bf16 %v753_v13, %v753_v13 }
 0x380   : > { %1103 = vmatmul.mubr.msk.bf16.vlgmr.msra.gmra.mrb[8].mxu0 %vm762_vm6, %v755_v14 }
 0x383   : > { %v1177_v15 = vpop.eup %1176 }
 0x384   : > { %v754_v16 = vmul.f32 %v1177_v15, %v1173_v4 }
 0x386   : > { %v756_v17 = vpack.c.bf16 %v754_v16, %v754_v16 }
 0x388   : > { %1109 = vmatmul.mubr.msk.bf16.vlgmr.msra.gmra.mrb[8].mxu1 %vm762_vm6, %v756_v17 }
 0x453   : > { %v804_v18 = vpop.f32.mrb[8].mxu0 }
 0x454   : > { %v861_v19 = vpack.c.bf16 %v804_v18, %v804_v18  ;;  %v1104_v20 = vpop.f32.mrb[9].mxu0 }
 0x455   : > { %v807_v21 = vpop.f32.mrb[10].mxu0 }
 0x456   : > { %864 = vst.msk [vmem:[%s382_s18] sm:$0x3] %vm863_vm7, %v861_v19  ;;  %v1105_v22 = vpop.f32.mrb[11].mxu0 }
 0x45b   : > { %v855_v23 = vpop.f32.mrb[8].mxu1 }
 0x45c   : > { %v862_v24 = vpack.c.bf16 %v855_v23, %v855_v23  ;;  %v1110_v25 = vpop.f32.mrb[9].mxu1 }
 0x45d   : > { %v858_v26 = vpop.f32.mrb[10].mxu1 }
 0x45e   : > { %865 = vst.msk [vmem:[%s382_s18 + $0x2] sm:$0x3] %vm863_vm7, %v862_v24  ;;  %v1111_v27 = vpop.f32.mrb[11].mxu1 }
 0x45f PF: > { %s17_s28 = sadd.s32 1, %s1216_s28   ;;  %s1451_s24 = smov %s1208_s26 }
 0x460   : > { %p14_p7 = scmp.ge.s32.totalorder %s17_s28, 6   ;;  %s1452_s25 = smov %s1212_s27 }
 0x461   : > { %s1453_s26 = smov %s1456_s29  ;;  %s1454_s27 = smov %s1460_s30 }
 0x462   :  { %16 = sbr.rel (!%p14_p7) target bundleno = 3 (0x3), region = 84 }

</bundles_post_ra>
